<compile_context>
chip_gen: v5e
topology: v5e:2x2
jax: 0.10.0
libtpu: 0.0.40
codegen_flags: <defaults>
</compile_context>

<pallas_src>
import functools
import math

import jax
import jax.numpy as jnp
from jax import lax
from jax.experimental import pallas as pl
from jax.experimental.pallas import tpu as pltpu

# Model hyper-parameters (module globals d_model / num_heads / d_k / d_ff / num_layers).
D_MODEL = 32
NUM_HEADS = 4
D_K = D_MODEL // NUM_HEADS
D_FF = 64
NUM_LAYERS = 2
EPS = 1e-5          # LayerNormEx1 epsilon
NEG_INF = -1e29     # MultiheadAttentionEx.inf


# ----------------------------- kernel helpers ------------------------------

def _layer_norm(t):
    # LayerNormEx1 with gamma=None, beta=None; two-pass variance + rsqrt.
    mean = jnp.mean(t, axis=-1, keepdims=True)
    xmu = t - mean
    var = jnp.mean(xmu * xmu, axis=-1, keepdims=True)
    return xmu * lax.rsqrt(var + EPS)


# -------------------------------- kernel -----------------------------------

def encoder_kernel(x_ref, emask_ref, wqkv_ref, bqkv_ref, wo_ref, bo_ref,
                   w1_ref, b1_ref, w2_ref, b2_ref, out_ref):
    xf = x_ref[0]                                           # (S, D) one batch element
    # Additive padding-mask bias (1, S), broadcast over query rows.
    attn_bias = jnp.where(emask_ref[0] != 0.0, 0.0, jnp.float32(NEG_INF))

    num_layers = wqkv_ref.shape[0]
    for l in range(num_layers):                             # static unroll (2 layers)
        # ---- pre-LN masked self-attention sublayer ----
        xn = _layer_norm(xf)
        # One fused QKV projection: (S, D) @ (D, 3D).  Scale already folded into
        # the Q columns/bias; K bias columns are zero (cancels under softmax).
        qkv = jnp.dot(xn, wqkv_ref[l],
                      preferred_element_type=jnp.float32) + bqkv_ref[l]
        heads = []
        for h in range(NUM_HEADS):                          # intra-vreg lane slices
            qh = qkv[:, h * D_K:(h + 1) * D_K]
            kh = qkv[:, D_MODEL + h * D_K:D_MODEL + (h + 1) * D_K]
            vh = qkv[:, 2 * D_MODEL + h * D_K:2 * D_MODEL + (h + 1) * D_K]
            # q @ k^T without materializing a transpose (contract last dims).
            sc = lax.dot_general(qh, kh, (((1,), (1,)), ((), ())),
                                 preferred_element_type=jnp.float32) + attn_bias
            m = jnp.max(sc, axis=-1, keepdims=True)
            e = jnp.exp(sc - m)
            p = e * pl.reciprocal(jnp.sum(e, axis=-1, keepdims=True), approx=True)
            heads.append(jnp.dot(p, vh, preferred_element_type=jnp.float32))
        concat = jnp.concatenate(heads, axis=-1)            # (S, D) — one vreg wide
        xf = xf + jnp.dot(concat, wo_ref[l],
                          preferred_element_type=jnp.float32) + bo_ref[l]

        # ---- pre-LN feed-forward sublayer ----
        xn2 = _layer_norm(xf)
        h1 = jnp.maximum(
            jnp.dot(xn2, w1_ref[l], preferred_element_type=jnp.float32) + b1_ref[l],
            0.0)
        xf = xf + jnp.dot(h1, w2_ref[l],
                          preferred_element_type=jnp.float32) + b2_ref[l]

    # EncoderEx final layer norm
    out_ref[0] = _layer_norm(xf)


# ------------------------------- wrapper ------------------------------------

def prepare_params(params):
    """One-time host-side prep: torch-style (out,in) weights -> (in,out),
    Q/K/V fused into one (D, 3D) matrix per layer, softmax scale folded into
    the Q part, b_k dropped (per-query-row constant under softmax)."""
    L = params["w_q"].shape[0]
    scale = 1.0 / math.sqrt(D_K)
    wq_t = jnp.swapaxes(params["w_q"], 1, 2) * scale
    wk_t = jnp.swapaxes(params["w_k"], 1, 2)
    wv_t = jnp.swapaxes(params["w_v"], 1, 2)
    wqkv = jnp.concatenate([wq_t, wk_t, wv_t], axis=-1)             # (L, D, 3D)
    bqkv = jnp.concatenate([params["b_q"] * scale,
                            jnp.zeros_like(params["b_k"]),
                            params["b_v"]], axis=-1).reshape(L, 1, 3 * D_MODEL)
    return dict(
        wqkv=wqkv, bqkv=bqkv,
        wo=jnp.swapaxes(params["w_o"], 1, 2),
        bo=params["b_o"].reshape(L, 1, D_MODEL),
        w1=jnp.swapaxes(params["w_1"], 1, 2),
        b1=params["b_1"].reshape(L, 1, D_FF),
        w2=jnp.swapaxes(params["w_2"], 1, 2),
        b2=params["b_2"].reshape(L, 1, D_MODEL),
    )


@jax.jit
def encoder_forward(x, e_mask, kp):
    B, S, D = x.shape
    emask = e_mask.astype(jnp.float32).reshape(B, 1, S)   # 1.0 = keep, 0.0 = pad

    operands = (x, emask, kp["wqkv"], kp["bqkv"], kp["wo"], kp["bo"],
                kp["w1"], kp["b1"], kp["w2"], kp["b2"])

    def const_spec(shape):                 # weights: same block every grid step
        n = len(shape)
        return pl.BlockSpec(shape, lambda b, n=n: (0,) * n)

    in_specs = [pl.BlockSpec((1, S, D), lambda b: (b, 0, 0)),     # x
                pl.BlockSpec((1, 1, S), lambda b: (b, 0, 0))]     # padding mask row
    in_specs += [const_spec(op.shape) for op in operands[2:]]

    return pl.pallas_call(
        encoder_kernel,
        out_shape=jax.ShapeDtypeStruct((B, S, D), jnp.float32),
        grid=(B,),                                      # one block per batch element
        in_specs=in_specs,
        out_specs=pl.BlockSpec((1, S, D), lambda b: (b, 0, 0)),
        compiler_params=pltpu.CompilerParams(
            dimension_semantics=("parallel",),          # v7x: shard across both TCs
            vmem_limit_bytes=32 * 1024 * 1024),
    )(*operands)


# --------------------------- pure-JAX reference ------------------------------

def _ref_ln(t):
    mean = t.mean(-1, keepdims=True)
    xmu = t - mean
    var = (xmu ** 2).mean(-1, keepdims=True)
    return xmu / jnp.sqrt(var + EPS)


def _ref_mha(x, wq, bq, wk, bk, wv, bv, wo, bo, mask):
    B, S, D = x.shape
    q1 = x @ wq.T + bq
    k1 = x @ wk.T + bk
    v1 = x @ wv.T + bv
    q3 = q1.reshape(B, S, NUM_HEADS, D_K).transpose(0, 2, 1, 3)
    k3 = k1.reshape(B, S, NUM_HEADS, D_K).transpose(0, 2, 1, 3)
    v3 = v1.reshape(B, S, NUM_HEADS, D_K).transpose(0, 2, 1, 3)
    sc = jnp.einsum("bhqd,bhkd->bhqk", q3, k3) / math.sqrt(D_K)
    sc = jnp.where(mask[:, None] == 0.0, NEG_INF, sc)
    p = jax.nn.softmax(sc, axis=-1)
    av = jnp.einsum("bhqk,bhkd->bhqd", p, v3)
    concat = av.transpose(0, 2, 1, 3).reshape(B, S, D)
    return concat @ wo.T + bo


def reference(x, e_mask, p):
    L = p["w_q"].shape[0]
    for l in range(L):
        x1 = _ref_ln(x)
        attn = _ref_mha(x1, p["w_q"][l], p["b_q"][l], p["w_k"][l], p["b_k"][l],
                        p["w_v"][l], p["b_v"][l], p["w_o"][l], p["b_o"][l], e_mask)
        xB = x + attn
        x2 = _ref_ln(xB)
        h = jnp.maximum(x2 @ p["w_1"][l].T + p["b_1"][l], 0.0)
        x = xB + h @ p["w_2"][l].T + p["b_2"][l]
    return _ref_ln(x)


# --------------------------------- main --------------------------------------

if __name__ == "__main__":
    key = jax.random.PRNGKey(0)
    B, S = 2, 8
    keys = jax.random.split(key, 16)

    x = jax.random.normal(keys[0], (B, S, D_MODEL), jnp.float32)
    # encoder padding mask: 1.0 = keep, 0.0 = padded (batch 1 has 2 padded keys)
    e_mask = jnp.ones((B, 1, S), jnp.float32).at[1, 0, S - 2:].set(0.0)

    def init(k, shape, scale=0.1):
        return scale * jax.random.normal(k, shape, jnp.float32)

    params = {
        "w_q": init(keys[1], (NUM_LAYERS, D_MODEL, D_MODEL)),   # torch-style (out, in)
        "b_q": init(keys[2], (NUM_LAYERS, D_MODEL)),
        "w_k": init(keys[3], (NUM_LAYERS, D_MODEL, D_MODEL)),
        "b_k": init(keys[4], (NUM_LAYERS, D_MODEL)),
        "w_v": init(keys[5], (NUM_LAYERS, D_MODEL, D_MODEL)),
        "b_v": init(keys[6], (NUM_LAYERS, D_MODEL)),
        "w_o": init(keys[7], (NUM_LAYERS, D_MODEL, D_MODEL)),
        "b_o": init(keys[8], (NUM_LAYERS, D_MODEL)),
        "w_1": init(keys[9], (NUM_LAYERS, D_FF, D_MODEL)),
        "b_1": init(keys[10], (NUM_LAYERS, D_FF)),
        "w_2": init(keys[11], (NUM_LAYERS, D_MODEL, D_FF)),
        "b_2": init(keys[12], (NUM_LAYERS, D_MODEL)),
    }

    # One-time weight prep hoisted out of the (jitted) per-call path.
    kp = jax.tree_util.tree_map(jax.block_until_ready, prepare_params(params))

    out = jax.block_until_ready(encoder_forward(x, e_mask, kp))
    ref = reference(x, e_mask, params)
    assert out.shape == (B, S, D_MODEL)
    # Tolerance 1e-3: approx reciprocal (EUP vrcp, ~2^-12) on the softmax
    # denominator; all other changes (scale fold, b_k drop) are exact math.
    assert jnp.allclose(out, ref, rtol=1e-3, atol=1e-3), "kernel mismatch vs reference"
    print("KERNEL_OK")
</pallas_src>

<mosaic_0001>
module attributes {stable_mosaic.version = 11 : i64} {
  func.func @encoder_kernel(%arg0: i32, %arg1: memref<1x8x32xf32, #tpu.memory_space<vmem>>, %arg2: memref<1x1x8xf32, #tpu.memory_space<vmem>>, %arg3: memref<2x32x96xf32, #tpu.memory_space<vmem>>, %arg4: memref<2x1x96xf32, #tpu.memory_space<vmem>>, %arg5: memref<2x32x32xf32, #tpu.memory_space<vmem>>, %arg6: memref<2x1x32xf32, #tpu.memory_space<vmem>>, %arg7: memref<2x32x64xf32, #tpu.memory_space<vmem>>, %arg8: memref<2x1x64xf32, #tpu.memory_space<vmem>>, %arg9: memref<2x64x32xf32, #tpu.memory_space<vmem>>, %arg10: memref<2x1x32xf32, #tpu.memory_space<vmem>>, %arg11: memref<1x8x32xf32, #tpu.memory_space<vmem>>) attributes {dimension_semantics = [#tpu.dimension_semantics<parallel>], iteration_bounds = array<i64: 2>, scalar_prefetch = 0 : i64, scratch_operands = 0 : i64, tpu.core_type = #tpu.core_type<tc>, window_params = [{transform_indices = @transform_0, window_bounds = array<i64: 1, 8, 32>}, {transform_indices = @transform_1, window_bounds = array<i64: 1, 1, 8>}, {pipeline_mode = #tpu.pipeline_mode<synchronous>, transform_indices = @transform_2, window_bounds = array<i64: 2, 32, 96>}, {pipeline_mode = #tpu.pipeline_mode<synchronous>, transform_indices = @transform_3, window_bounds = array<i64: 2, 1, 96>}, {pipeline_mode = #tpu.pipeline_mode<synchronous>, transform_indices = @transform_4, window_bounds = array<i64: 2, 32, 32>}, {pipeline_mode = #tpu.pipeline_mode<synchronous>, transform_indices = @transform_5, window_bounds = array<i64: 2, 1, 32>}, {pipeline_mode = #tpu.pipeline_mode<synchronous>, transform_indices = @transform_6, window_bounds = array<i64: 2, 32, 64>}, {pipeline_mode = #tpu.pipeline_mode<synchronous>, transform_indices = @transform_7, window_bounds = array<i64: 2, 1, 64>}, {pipeline_mode = #tpu.pipeline_mode<synchronous>, transform_indices = @transform_8, window_bounds = array<i64: 2, 64, 32>}, {pipeline_mode = #tpu.pipeline_mode<synchronous>, transform_indices = @transform_9, window_bounds = array<i64: 2, 1, 32>}, {transform_indices = @transform_10, window_bounds = array<i64: 1, 8, 32>}]} {
    %c0 = arith.constant 0 : index
    %c0_0 = arith.constant 0 : index
    %c0_1 = arith.constant 0 : index
    %0 = vector.load %arg1[%c0, %c0_0, %c0_1] : memref<1x8x32xf32, #tpu.memory_space<vmem>>, vector<1x8x32xf32>
    %1 = vector.shape_cast %0 : vector<1x8x32xf32> to vector<8x32xf32>
    %c0_2 = arith.constant 0 : index
    %c0_3 = arith.constant 0 : index
    %c0_4 = arith.constant 0 : index
    %2 = vector.load %arg2[%c0_2, %c0_3, %c0_4] : memref<1x1x8xf32, #tpu.memory_space<vmem>>, vector<1x1x8xf32>
    %3 = vector.shape_cast %2 : vector<1x1x8xf32> to vector<1x8xf32>
    %cst = arith.constant 0.000000e+00 : f32
    %4 = vector.broadcast %cst : f32 to vector<1x8xf32>
    %5 = arith.cmpf one, %3, %4 : vector<1x8xf32>
    %cst_5 = arith.constant 0.000000e+00 : f32
    %cst_6 = arith.constant -1.000000e+29 : f32
    %6 = vector.broadcast %cst_5 : f32 to vector<1x8xf32>
    %7 = vector.broadcast %cst_6 : f32 to vector<1x8xf32>
    %8 = arith.select %5, %6, %7 : vector<1x8xi1>, vector<1x8xf32>
    %cst_7 = arith.constant dense<0.000000e+00> : vector<8xf32>
    %9 = vector.multi_reduction <add>, %1, %cst_7 [1] : vector<8x32xf32> to vector<8xf32>
    %10 = vector.shape_cast %9 : vector<8xf32> to vector<8x1xf32>
    %cst_8 = arith.constant 3.200000e+01 : f32
    %11 = vector.broadcast %cst_8 : f32 to vector<8x1xf32>
    %12 = arith.divf %10, %11 : vector<8x1xf32>
    %13 = vector.broadcast %12 : vector<8x1xf32> to vector<8x32xf32>
    %14 = arith.subf %1, %13 : vector<8x32xf32>
    %15 = arith.mulf %14, %14 : vector<8x32xf32>
    %cst_9 = arith.constant dense<0.000000e+00> : vector<8xf32>
    %16 = vector.multi_reduction <add>, %15, %cst_9 [1] : vector<8x32xf32> to vector<8xf32>
    %17 = vector.shape_cast %16 : vector<8xf32> to vector<8x1xf32>
    %cst_10 = arith.constant 3.200000e+01 : f32
    %18 = vector.broadcast %cst_10 : f32 to vector<8x1xf32>
    %19 = arith.divf %17, %18 : vector<8x1xf32>
    %cst_11 = arith.constant 9.99999974E-6 : f32
    %20 = vector.broadcast %cst_11 : f32 to vector<8x1xf32>
    %21 = arith.addf %19, %20 : vector<8x1xf32>
    %22 = math.rsqrt %21 : vector<8x1xf32>
    %23 = vector.broadcast %22 : vector<8x1xf32> to vector<8x32xf32>
    %24 = arith.mulf %14, %23 : vector<8x32xf32>
    %c0_12 = arith.constant 0 : index
    %c0_13 = arith.constant 0 : index
    %c0_14 = arith.constant 0 : index
    %25 = vector.load %arg3[%c0_12, %c0_13, %c0_14] : memref<2x32x96xf32, #tpu.memory_space<vmem>>, vector<1x32x96xf32>
    %26 = vector.shape_cast %25 : vector<1x32x96xf32> to vector<32x96xf32>
    %cst_15 = arith.constant dense<0.000000e+00> : vector<8x96xf32>
    %27 = tpu.matmul %24, %26, %cst_15 {dimension_numbers = #tpu.dot_dimension_numbers<[1], [0], [0], [1], [0, 0, 1, 1], [], []>} : vector<8x32xf32>, vector<32x96xf32>, vector<8x96xf32> -> vector<8x96xf32>
    %c0_16 = arith.constant 0 : index
    %c0_17 = arith.constant 0 : index
    %c0_18 = arith.constant 0 : index
    %28 = vector.load %arg4[%c0_16, %c0_17, %c0_18] : memref<2x1x96xf32, #tpu.memory_space<vmem>>, vector<1x1x96xf32>
    %29 = vector.shape_cast %28 : vector<1x1x96xf32> to vector<1x96xf32>
    %30 = vector.broadcast %29 : vector<1x96xf32> to vector<8x96xf32>
    %31 = arith.addf %27, %30 : vector<8x96xf32>
    %32 = vector.extract_strided_slice %31 {offsets = [0, 0], sizes = [8, 8], strides = [1, 1]} : vector<8x96xf32> to vector<8x8xf32>
    %33 = vector.extract_strided_slice %31 {offsets = [0, 32], sizes = [8, 8], strides = [1, 1]} : vector<8x96xf32> to vector<8x8xf32>
    %34 = vector.extract_strided_slice %31 {offsets = [0, 64], sizes = [8, 8], strides = [1, 1]} : vector<8x96xf32> to vector<8x8xf32>
    %cst_19 = arith.constant dense<0.000000e+00> : vector<8x8xf32>
    %35 = tpu.matmul %32, %33, %cst_19 {dimension_numbers = #tpu.dot_dimension_numbers<[1], [1], [0], [0], [0, 0, 1, 0], [], []>} : vector<8x8xf32>, vector<8x8xf32>, vector<8x8xf32> -> vector<8x8xf32>
    %36 = vector.broadcast %8 : vector<1x8xf32> to vector<8x8xf32>
    %37 = arith.addf %35, %36 : vector<8x8xf32>
    %cst_20 = arith.constant dense<0xFF800000> : vector<8xf32>
    %38 = vector.multi_reduction <maximumf>, %37, %cst_20 [1] : vector<8x8xf32> to vector<8xf32>
    %39 = vector.shape_cast %38 : vector<8xf32> to vector<8x1xf32>
    %40 = vector.broadcast %39 : vector<8x1xf32> to vector<8x8xf32>
    %41 = arith.subf %37, %40 : vector<8x8xf32>
    %42 = math.exp %41 : vector<8x8xf32>
    %cst_21 = arith.constant dense<0.000000e+00> : vector<8xf32>
    %43 = vector.multi_reduction <add>, %42, %cst_21 [1] : vector<8x8xf32> to vector<8xf32>
    %44 = vector.shape_cast %43 : vector<8xf32> to vector<8x1xf32>
    %45 = tpu.reciprocal %44 {approx = true} : vector<8x1xf32> -> vector<8x1xf32>
    %46 = vector.broadcast %45 : vector<8x1xf32> to vector<8x8xf32>
    %47 = arith.mulf %42, %46 : vector<8x8xf32>
    %cst_22 = arith.constant dense<0.000000e+00> : vector<8x8xf32>
    %48 = tpu.matmul %47, %34, %cst_22 {dimension_numbers = #tpu.dot_dimension_numbers<[1], [0], [0], [1], [0, 0, 1, 1], [], []>} : vector<8x8xf32>, vector<8x8xf32>, vector<8x8xf32> -> vector<8x8xf32>
    %49 = vector.extract_strided_slice %31 {offsets = [0, 8], sizes = [8, 8], strides = [1, 1]} : vector<8x96xf32> to vector<8x8xf32>
    %50 = vector.extract_strided_slice %31 {offsets = [0, 40], sizes = [8, 8], strides = [1, 1]} : vector<8x96xf32> to vector<8x8xf32>
    %51 = vector.extract_strided_slice %31 {offsets = [0, 72], sizes = [8, 8], strides = [1, 1]} : vector<8x96xf32> to vector<8x8xf32>
    %cst_23 = arith.constant dense<0.000000e+00> : vector<8x8xf32>
    %52 = tpu.matmul %49, %50, %cst_23 {dimension_numbers = #tpu.dot_dimension_numbers<[1], [1], [0], [0], [0, 0, 1, 0], [], []>} : vector<8x8xf32>, vector<8x8xf32>, vector<8x8xf32> -> vector<8x8xf32>
    %53 = vector.broadcast %8 : vector<1x8xf32> to vector<8x8xf32>
    %54 = arith.addf %52, %53 : vector<8x8xf32>
    %cst_24 = arith.constant dense<0xFF800000> : vector<8xf32>
    %55 = vector.multi_reduction <maximumf>, %54, %cst_24 [1] : vector<8x8xf32> to vector<8xf32>
    %56 = vector.shape_cast %55 : vector<8xf32> to vector<8x1xf32>
    %57 = vector.broadcast %56 : vector<8x1xf32> to vector<8x8xf32>
    %58 = arith.subf %54, %57 : vector<8x8xf32>
    %59 = math.exp %58 : vector<8x8xf32>
    %cst_25 = arith.constant dense<0.000000e+00> : vector<8xf32>
    %60 = vector.multi_reduction <add>, %59, %cst_25 [1] : vector<8x8xf32> to vector<8xf32>
    %61 = vector.shape_cast %60 : vector<8xf32> to vector<8x1xf32>
    %62 = tpu.reciprocal %61 {approx = true} : vector<8x1xf32> -> vector<8x1xf32>
    %63 = vector.broadcast %62 : vector<8x1xf32> to vector<8x8xf32>
    %64 = arith.mulf %59, %63 : vector<8x8xf32>
    %cst_26 = arith.constant dense<0.000000e+00> : vector<8x8xf32>
    %65 = tpu.matmul %64, %51, %cst_26 {dimension_numbers = #tpu.dot_dimension_numbers<[1], [0], [0], [1], [0, 0, 1, 1], [], []>} : vector<8x8xf32>, vector<8x8xf32>, vector<8x8xf32> -> vector<8x8xf32>
    %66 = vector.extract_strided_slice %31 {offsets = [0, 16], sizes = [8, 8], strides = [1, 1]} : vector<8x96xf32> to vector<8x8xf32>
    %67 = vector.extract_strided_slice %31 {offsets = [0, 48], sizes = [8, 8], strides = [1, 1]} : vector<8x96xf32> to vector<8x8xf32>
    %68 = vector.extract_strided_slice %31 {offsets = [0, 80], sizes = [8, 8], strides = [1, 1]} : vector<8x96xf32> to vector<8x8xf32>
    %cst_27 = arith.constant dense<0.000000e+00> : vector<8x8xf32>
    %69 = tpu.matmul %66, %67, %cst_27 {dimension_numbers = #tpu.dot_dimension_numbers<[1], [1], [0], [0], [0, 0, 1, 0], [], []>} : vector<8x8xf32>, vector<8x8xf32>, vector<8x8xf32> -> vector<8x8xf32>
    %70 = vector.broadcast %8 : vector<1x8xf32> to vector<8x8xf32>
    %71 = arith.addf %69, %70 : vector<8x8xf32>
    %cst_28 = arith.constant dense<0xFF800000> : vector<8xf32>
    %72 = vector.multi_reduction <maximumf>, %71, %cst_28 [1] : vector<8x8xf32> to vector<8xf32>
    %73 = vector.shape_cast %72 : vector<8xf32> to vector<8x1xf32>
    %74 = vector.broadcast %73 : vector<8x1xf32> to vector<8x8xf32>
    %75 = arith.subf %71, %74 : vector<8x8xf32>
    %76 = math.exp %75 : vector<8x8xf32>
    %cst_29 = arith.constant dense<0.000000e+00> : vector<8xf32>
    %77 = vector.multi_reduction <add>, %76, %cst_29 [1] : vector<8x8xf32> to vector<8xf32>
    %78 = vector.shape_cast %77 : vector<8xf32> to vector<8x1xf32>
    %79 = tpu.reciprocal %78 {approx = true} : vector<8x1xf32> -> vector<8x1xf32>
    %80 = vector.broadcast %79 : vector<8x1xf32> to vector<8x8xf32>
    %81 = arith.mulf %76, %80 : vector<8x8xf32>
    %cst_30 = arith.constant dense<0.000000e+00> : vector<8x8xf32>
    %82 = tpu.matmul %81, %68, %cst_30 {dimension_numbers = #tpu.dot_dimension_numbers<[1], [0], [0], [1], [0, 0, 1, 1], [], []>} : vector<8x8xf32>, vector<8x8xf32>, vector<8x8xf32> -> vector<8x8xf32>
    %83 = vector.extract_strided_slice %31 {offsets = [0, 24], sizes = [8, 8], strides = [1, 1]} : vector<8x96xf32> to vector<8x8xf32>
    %84 = vector.extract_strided_slice %31 {offsets = [0, 56], sizes = [8, 8], strides = [1, 1]} : vector<8x96xf32> to vector<8x8xf32>
    %85 = vector.extract_strided_slice %31 {offsets = [0, 88], sizes = [8, 8], strides = [1, 1]} : vector<8x96xf32> to vector<8x8xf32>
    %cst_31 = arith.constant dense<0.000000e+00> : vector<8x8xf32>
    %86 = tpu.matmul %83, %84, %cst_31 {dimension_numbers = #tpu.dot_dimension_numbers<[1], [1], [0], [0], [0, 0, 1, 0], [], []>} : vector<8x8xf32>, vector<8x8xf32>, vector<8x8xf32> -> vector<8x8xf32>
    %87 = vector.broadcast %8 : vector<1x8xf32> to vector<8x8xf32>
    %88 = arith.addf %86, %87 : vector<8x8xf32>
    %cst_32 = arith.constant dense<0xFF800000> : vector<8xf32>
    %89 = vector.multi_reduction <maximumf>, %88, %cst_32 [1] : vector<8x8xf32> to vector<8xf32>
    %90 = vector.shape_cast %89 : vector<8xf32> to vector<8x1xf32>
    %91 = vector.broadcast %90 : vector<8x1xf32> to vector<8x8xf32>
    %92 = arith.subf %88, %91 : vector<8x8xf32>
    %93 = math.exp %92 : vector<8x8xf32>
    %cst_33 = arith.constant dense<0.000000e+00> : vector<8xf32>
    %94 = vector.multi_reduction <add>, %93, %cst_33 [1] : vector<8x8xf32> to vector<8xf32>
    %95 = vector.shape_cast %94 : vector<8xf32> to vector<8x1xf32>
    %96 = tpu.reciprocal %95 {approx = true} : vector<8x1xf32> -> vector<8x1xf32>
    %97 = vector.broadcast %96 : vector<8x1xf32> to vector<8x8xf32>
    %98 = arith.mulf %93, %97 : vector<8x8xf32>
    %cst_34 = arith.constant dense<0.000000e+00> : vector<8x8xf32>
    %99 = tpu.matmul %98, %85, %cst_34 {dimension_numbers = #tpu.dot_dimension_numbers<[1], [0], [0], [1], [0, 0, 1, 1], [], []>} : vector<8x8xf32>, vector<8x8xf32>, vector<8x8xf32> -> vector<8x8xf32>
    %100 = tpu.concatenate %48, %65, %82, %99 in 1 : vector<8x8xf32>, vector<8x8xf32>, vector<8x8xf32>, vector<8x8xf32> -> vector<8x32xf32>
    %c0_35 = arith.constant 0 : index
    %c0_36 = arith.constant 0 : index
    %c0_37 = arith.constant 0 : index
    %101 = vector.load %arg5[%c0_35, %c0_36, %c0_37] : memref<2x32x32xf32, #tpu.memory_space<vmem>>, vector<1x32x32xf32>
    %102 = vector.shape_cast %101 : vector<1x32x32xf32> to vector<32x32xf32>
    %cst_38 = arith.constant dense<0.000000e+00> : vector<8x32xf32>
    %103 = tpu.matmul %100, %102, %cst_38 {dimension_numbers = #tpu.dot_dimension_numbers<[1], [0], [0], [1], [0, 0, 1, 1], [], []>} : vector<8x32xf32>, vector<32x32xf32>, vector<8x32xf32> -> vector<8x32xf32>
    %104 = arith.addf %1, %103 : vector<8x32xf32>
    %c0_39 = arith.constant 0 : index
    %c0_40 = arith.constant 0 : index
    %c0_41 = arith.constant 0 : index
    %105 = vector.load %arg6[%c0_39, %c0_40, %c0_41] : memref<2x1x32xf32, #tpu.memory_space<vmem>>, vector<1x1x32xf32>
    %106 = vector.shape_cast %105 : vector<1x1x32xf32> to vector<1x32xf32>
    %107 = vector.broadcast %106 : vector<1x32xf32> to vector<8x32xf32>
    %108 = arith.addf %104, %107 : vector<8x32xf32>
    %cst_42 = arith.constant dense<0.000000e+00> : vector<8xf32>
    %109 = vector.multi_reduction <add>, %108, %cst_42 [1] : vector<8x32xf32> to vector<8xf32>
    %110 = vector.shape_cast %109 : vector<8xf32> to vector<8x1xf32>
    %cst_43 = arith.constant 3.200000e+01 : f32
    %111 = vector.broadcast %cst_43 : f32 to vector<8x1xf32>
    %112 = arith.divf %110, %111 : vector<8x1xf32>
    %113 = vector.broadcast %112 : vector<8x1xf32> to vector<8x32xf32>
    %114 = arith.subf %108, %113 : vector<8x32xf32>
    %115 = arith.mulf %114, %114 : vector<8x32xf32>
    %cst_44 = arith.constant dense<0.000000e+00> : vector<8xf32>
    %116 = vector.multi_reduction <add>, %115, %cst_44 [1] : vector<8x32xf32> to vector<8xf32>
    %117 = vector.shape_cast %116 : vector<8xf32> to vector<8x1xf32>
    %cst_45 = arith.constant 3.200000e+01 : f32
    %118 = vector.broadcast %cst_45 : f32 to vector<8x1xf32>
    %119 = arith.divf %117, %118 : vector<8x1xf32>
    %cst_46 = arith.constant 9.99999974E-6 : f32
    %120 = vector.broadcast %cst_46 : f32 to vector<8x1xf32>
    %121 = arith.addf %119, %120 : vector<8x1xf32>
    %122 = math.rsqrt %121 : vector<8x1xf32>
    %123 = vector.broadcast %122 : vector<8x1xf32> to vector<8x32xf32>
    %124 = arith.mulf %114, %123 : vector<8x32xf32>
    %c0_47 = arith.constant 0 : index
    %c0_48 = arith.constant 0 : index
    %c0_49 = arith.constant 0 : index
    %125 = vector.load %arg7[%c0_47, %c0_48, %c0_49] : memref<2x32x64xf32, #tpu.memory_space<vmem>>, vector<1x32x64xf32>
    %126 = vector.shape_cast %125 : vector<1x32x64xf32> to vector<32x64xf32>
    %cst_50 = arith.constant dense<0.000000e+00> : vector<8x64xf32>
    %127 = tpu.matmul %124, %126, %cst_50 {dimension_numbers = #tpu.dot_dimension_numbers<[1], [0], [0], [1], [0, 0, 1, 1], [], []>} : vector<8x32xf32>, vector<32x64xf32>, vector<8x64xf32> -> vector<8x64xf32>
    %c0_51 = arith.constant 0 : index
    %c0_52 = arith.constant 0 : index
    %c0_53 = arith.constant 0 : index
    %128 = vector.load %arg8[%c0_51, %c0_52, %c0_53] : memref<2x1x64xf32, #tpu.memory_space<vmem>>, vector<1x1x64xf32>
    %129 = vector.shape_cast %128 : vector<1x1x64xf32> to vector<1x64xf32>
    %130 = vector.broadcast %129 : vector<1x64xf32> to vector<8x64xf32>
    %131 = arith.addf %127, %130 : vector<8x64xf32>
    %cst_54 = arith.constant 0.000000e+00 : f32
    %132 = vector.broadcast %cst_54 : f32 to vector<8x64xf32>
    %133 = arith.maximumf %131, %132 : vector<8x64xf32>
    %c0_55 = arith.constant 0 : index
    %c0_56 = arith.constant 0 : index
    %c0_57 = arith.constant 0 : index
    %134 = vector.load %arg9[%c0_55, %c0_56, %c0_57] : memref<2x64x32xf32, #tpu.memory_space<vmem>>, vector<1x64x32xf32>
    %135 = vector.shape_cast %134 : vector<1x64x32xf32> to vector<64x32xf32>
    %cst_58 = arith.constant dense<0.000000e+00> : vector<8x32xf32>
    %136 = tpu.matmul %133, %135, %cst_58 {dimension_numbers = #tpu.dot_dimension_numbers<[1], [0], [0], [1], [0, 0, 1, 1], [], []>} : vector<8x64xf32>, vector<64x32xf32>, vector<8x32xf32> -> vector<8x32xf32>
    %137 = arith.addf %108, %136 : vector<8x32xf32>
    %c0_59 = arith.constant 0 : index
    %c0_60 = arith.constant 0 : index
    %c0_61 = arith.constant 0 : index
    %138 = vector.load %arg10[%c0_59, %c0_60, %c0_61] : memref<2x1x32xf32, #tpu.memory_space<vmem>>, vector<1x1x32xf32>
    %139 = vector.shape_cast %138 : vector<1x1x32xf32> to vector<1x32xf32>
    %140 = vector.broadcast %139 : vector<1x32xf32> to vector<8x32xf32>
    %141 = arith.addf %137, %140 : vector<8x32xf32>
    %cst_62 = arith.constant dense<0.000000e+00> : vector<8xf32>
    %142 = vector.multi_reduction <add>, %141, %cst_62 [1] : vector<8x32xf32> to vector<8xf32>
    %143 = vector.shape_cast %142 : vector<8xf32> to vector<8x1xf32>
    %cst_63 = arith.constant 3.200000e+01 : f32
    %144 = vector.broadcast %cst_63 : f32 to vector<8x1xf32>
    %145 = arith.divf %143, %144 : vector<8x1xf32>
    %146 = vector.broadcast %145 : vector<8x1xf32> to vector<8x32xf32>
    %147 = arith.subf %141, %146 : vector<8x32xf32>
    %148 = arith.mulf %147, %147 : vector<8x32xf32>
    %cst_64 = arith.constant dense<0.000000e+00> : vector<8xf32>
    %149 = vector.multi_reduction <add>, %148, %cst_64 [1] : vector<8x32xf32> to vector<8xf32>
    %150 = vector.shape_cast %149 : vector<8xf32> to vector<8x1xf32>
    %cst_65 = arith.constant 3.200000e+01 : f32
    %151 = vector.broadcast %cst_65 : f32 to vector<8x1xf32>
    %152 = arith.divf %150, %151 : vector<8x1xf32>
    %cst_66 = arith.constant 9.99999974E-6 : f32
    %153 = vector.broadcast %cst_66 : f32 to vector<8x1xf32>
    %154 = arith.addf %152, %153 : vector<8x1xf32>
    %155 = math.rsqrt %154 : vector<8x1xf32>
    %156 = vector.broadcast %155 : vector<8x1xf32> to vector<8x32xf32>
    %157 = arith.mulf %147, %156 : vector<8x32xf32>
    %c1 = arith.constant 1 : index
    %c0_67 = arith.constant 0 : index
    %c0_68 = arith.constant 0 : index
    %158 = vector.load %arg3[%c1, %c0_67, %c0_68] : memref<2x32x96xf32, #tpu.memory_space<vmem>>, vector<1x32x96xf32>
    %159 = vector.shape_cast %158 : vector<1x32x96xf32> to vector<32x96xf32>
    %cst_69 = arith.constant dense<0.000000e+00> : vector<8x96xf32>
    %160 = tpu.matmul %157, %159, %cst_69 {dimension_numbers = #tpu.dot_dimension_numbers<[1], [0], [0], [1], [0, 0, 1, 1], [], []>} : vector<8x32xf32>, vector<32x96xf32>, vector<8x96xf32> -> vector<8x96xf32>
    %c1_70 = arith.constant 1 : index
    %c0_71 = arith.constant 0 : index
    %c0_72 = arith.constant 0 : index
    %161 = vector.load %arg4[%c1_70, %c0_71, %c0_72] : memref<2x1x96xf32, #tpu.memory_space<vmem>>, vector<1x1x96xf32>
    %162 = vector.shape_cast %161 : vector<1x1x96xf32> to vector<1x96xf32>
    %163 = vector.broadcast %162 : vector<1x96xf32> to vector<8x96xf32>
    %164 = arith.addf %160, %163 : vector<8x96xf32>
    %165 = vector.extract_strided_slice %164 {offsets = [0, 0], sizes = [8, 8], strides = [1, 1]} : vector<8x96xf32> to vector<8x8xf32>
    %166 = vector.extract_strided_slice %164 {offsets = [0, 32], sizes = [8, 8], strides = [1, 1]} : vector<8x96xf32> to vector<8x8xf32>
    %167 = vector.extract_strided_slice %164 {offsets = [0, 64], sizes = [8, 8], strides = [1, 1]} : vector<8x96xf32> to vector<8x8xf32>
    %cst_73 = arith.constant dense<0.000000e+00> : vector<8x8xf32>
    %168 = tpu.matmul %165, %166, %cst_73 {dimension_numbers = #tpu.dot_dimension_numbers<[1], [1], [0], [0], [0, 0, 1, 0], [], []>} : vector<8x8xf32>, vector<8x8xf32>, vector<8x8xf32> -> vector<8x8xf32>
    %169 = vector.broadcast %8 : vector<1x8xf32> to vector<8x8xf32>
    %170 = arith.addf %168, %169 : vector<8x8xf32>
    %cst_74 = arith.constant dense<0xFF800000> : vector<8xf32>
    %171 = vector.multi_reduction <maximumf>, %170, %cst_74 [1] : vector<8x8xf32> to vector<8xf32>
    %172 = vector.shape_cast %171 : vector<8xf32> to vector<8x1xf32>
    %173 = vector.broadcast %172 : vector<8x1xf32> to vector<8x8xf32>
    %174 = arith.subf %170, %173 : vector<8x8xf32>
    %175 = math.exp %174 : vector<8x8xf32>
    %cst_75 = arith.constant dense<0.000000e+00> : vector<8xf32>
    %176 = vector.multi_reduction <add>, %175, %cst_75 [1] : vector<8x8xf32> to vector<8xf32>
    %177 = vector.shape_cast %176 : vector<8xf32> to vector<8x1xf32>
    %178 = tpu.reciprocal %177 {approx = true} : vector<8x1xf32> -> vector<8x1xf32>
    %179 = vector.broadcast %178 : vector<8x1xf32> to vector<8x8xf32>
    %180 = arith.mulf %175, %179 : vector<8x8xf32>
    %cst_76 = arith.constant dense<0.000000e+00> : vector<8x8xf32>
    %181 = tpu.matmul %180, %167, %cst_76 {dimension_numbers = #tpu.dot_dimension_numbers<[1], [0], [0], [1], [0, 0, 1, 1], [], []>} : vector<8x8xf32>, vector<8x8xf32>, vector<8x8xf32> -> vector<8x8xf32>
    %182 = vector.extract_strided_slice %164 {offsets = [0, 8], sizes = [8, 8], strides = [1, 1]} : vector<8x96xf32> to vector<8x8xf32>
    %183 = vector.extract_strided_slice %164 {offsets = [0, 40], sizes = [8, 8], strides = [1, 1]} : vector<8x96xf32> to vector<8x8xf32>
    %184 = vector.extract_strided_slice %164 {offsets = [0, 72], sizes = [8, 8], strides = [1, 1]} : vector<8x96xf32> to vector<8x8xf32>
    %cst_77 = arith.constant dense<0.000000e+00> : vector<8x8xf32>
    %185 = tpu.matmul %182, %183, %cst_77 {dimension_numbers = #tpu.dot_dimension_numbers<[1], [1], [0], [0], [0, 0, 1, 0], [], []>} : vector<8x8xf32>, vector<8x8xf32>, vector<8x8xf32> -> vector<8x8xf32>
    %186 = vector.broadcast %8 : vector<1x8xf32> to vector<8x8xf32>
    %187 = arith.addf %185, %186 : vector<8x8xf32>
    %cst_78 = arith.constant dense<0xFF800000> : vector<8xf32>
    %188 = vector.multi_reduction <maximumf>, %187, %cst_78 [1] : vector<8x8xf32> to vector<8xf32>
    %189 = vector.shape_cast %188 : vector<8xf32> to vector<8x1xf32>
    %190 = vector.broadcast %189 : vector<8x1xf32> to vector<8x8xf32>
    %191 = arith.subf %187, %190 : vector<8x8xf32>
    %192 = math.exp %191 : vector<8x8xf32>
    %cst_79 = arith.constant dense<0.000000e+00> : vector<8xf32>
    %193 = vector.multi_reduction <add>, %192, %cst_79 [1] : vector<8x8xf32> to vector<8xf32>
    %194 = vector.shape_cast %193 : vector<8xf32> to vector<8x1xf32>
    %195 = tpu.reciprocal %194 {approx = true} : vector<8x1xf32> -> vector<8x1xf32>
    %196 = vector.broadcast %195 : vector<8x1xf32> to vector<8x8xf32>
    %197 = arith.mulf %192, %196 : vector<8x8xf32>
    %cst_80 = arith.constant dense<0.000000e+00> : vector<8x8xf32>
    %198 = tpu.matmul %197, %184, %cst_80 {dimension_numbers = #tpu.dot_dimension_numbers<[1], [0], [0], [1], [0, 0, 1, 1], [], []>} : vector<8x8xf32>, vector<8x8xf32>, vector<8x8xf32> -> vector<8x8xf32>
    %199 = vector.extract_strided_slice %164 {offsets = [0, 16], sizes = [8, 8], strides = [1, 1]} : vector<8x96xf32> to vector<8x8xf32>
    %200 = vector.extract_strided_slice %164 {offsets = [0, 48], sizes = [8, 8], strides = [1, 1]} : vector<8x96xf32> to vector<8x8xf32>
    %201 = vector.extract_strided_slice %164 {offsets = [0, 80], sizes = [8, 8], strides = [1, 1]} : vector<8x96xf32> to vector<8x8xf32>
    %cst_81 = arith.constant dense<0.000000e+00> : vector<8x8xf32>
    %202 = tpu.matmul %199, %200, %cst_81 {dimension_numbers = #tpu.dot_dimension_numbers<[1], [1], [0], [0], [0, 0, 1, 0], [], []>} : vector<8x8xf32>, vector<8x8xf32>, vector<8x8xf32> -> vector<8x8xf32>
    %203 = vector.broadcast %8 : vector<1x8xf32> to vector<8x8xf32>
    %204 = arith.addf %202, %203 : vector<8x8xf32>
    %cst_82 = arith.constant dense<0xFF800000> : vector<8xf32>
    %205 = vector.multi_reduction <maximumf>, %204, %cst_82 [1] : vector<8x8xf32> to vector<8xf32>
    %206 = vector.shape_cast %205 : vector<8xf32> to vector<8x1xf32>
    %207 = vector.broadcast %206 : vector<8x1xf32> to vector<8x8xf32>
    %208 = arith.subf %204, %207 : vector<8x8xf32>
    %209 = math.exp %208 : vector<8x8xf32>
    %cst_83 = arith.constant dense<0.000000e+00> : vector<8xf32>
    %210 = vector.multi_reduction <add>, %209, %cst_83 [1] : vector<8x8xf32> to vector<8xf32>
    %211 = vector.shape_cast %210 : vector<8xf32> to vector<8x1xf32>
    %212 = tpu.reciprocal %211 {approx = true} : vector<8x1xf32> -> vector<8x1xf32>
    %213 = vector.broadcast %212 : vector<8x1xf32> to vector<8x8xf32>
    %214 = arith.mulf %209, %213 : vector<8x8xf32>
    %cst_84 = arith.constant dense<0.000000e+00> : vector<8x8xf32>
    %215 = tpu.matmul %214, %201, %cst_84 {dimension_numbers = #tpu.dot_dimension_numbers<[1], [0], [0], [1], [0, 0, 1, 1], [], []>} : vector<8x8xf32>, vector<8x8xf32>, vector<8x8xf32> -> vector<8x8xf32>
    %216 = vector.extract_strided_slice %164 {offsets = [0, 24], sizes = [8, 8], strides = [1, 1]} : vector<8x96xf32> to vector<8x8xf32>
    %217 = vector.extract_strided_slice %164 {offsets = [0, 56], sizes = [8, 8], strides = [1, 1]} : vector<8x96xf32> to vector<8x8xf32>
    %218 = vector.extract_strided_slice %164 {offsets = [0, 88], sizes = [8, 8], strides = [1, 1]} : vector<8x96xf32> to vector<8x8xf32>
    %cst_85 = arith.constant dense<0.000000e+00> : vector<8x8xf32>
    %219 = tpu.matmul %216, %217, %cst_85 {dimension_numbers = #tpu.dot_dimension_numbers<[1], [1], [0], [0], [0, 0, 1, 0], [], []>} : vector<8x8xf32>, vector<8x8xf32>, vector<8x8xf32> -> vector<8x8xf32>
    %220 = vector.broadcast %8 : vector<1x8xf32> to vector<8x8xf32>
    %221 = arith.addf %219, %220 : vector<8x8xf32>
    %cst_86 = arith.constant dense<0xFF800000> : vector<8xf32>
    %222 = vector.multi_reduction <maximumf>, %221, %cst_86 [1] : vector<8x8xf32> to vector<8xf32>
    %223 = vector.shape_cast %222 : vector<8xf32> to vector<8x1xf32>
    %224 = vector.broadcast %223 : vector<8x1xf32> to vector<8x8xf32>
    %225 = arith.subf %221, %224 : vector<8x8xf32>
    %226 = math.exp %225 : vector<8x8xf32>
    %cst_87 = arith.constant dense<0.000000e+00> : vector<8xf32>
    %227 = vector.multi_reduction <add>, %226, %cst_87 [1] : vector<8x8xf32> to vector<8xf32>
    %228 = vector.shape_cast %227 : vector<8xf32> to vector<8x1xf32>
    %229 = tpu.reciprocal %228 {approx = true} : vector<8x1xf32> -> vector<8x1xf32>
    %230 = vector.broadcast %229 : vector<8x1xf32> to vector<8x8xf32>
    %231 = arith.mulf %226, %230 : vector<8x8xf32>
    %cst_88 = arith.constant dense<0.000000e+00> : vector<8x8xf32>
    %232 = tpu.matmul %231, %218, %cst_88 {dimension_numbers = #tpu.dot_dimension_numbers<[1], [0], [0], [1], [0, 0, 1, 1], [], []>} : vector<8x8xf32>, vector<8x8xf32>, vector<8x8xf32> -> vector<8x8xf32>
    %233 = tpu.concatenate %181, %198, %215, %232 in 1 : vector<8x8xf32>, vector<8x8xf32>, vector<8x8xf32>, vector<8x8xf32> -> vector<8x32xf32>
    %c1_89 = arith.constant 1 : index
    %c0_90 = arith.constant 0 : index
    %c0_91 = arith.constant 0 : index
    %234 = vector.load %arg5[%c1_89, %c0_90, %c0_91] : memref<2x32x32xf32, #tpu.memory_space<vmem>>, vector<1x32x32xf32>
    %235 = vector.shape_cast %234 : vector<1x32x32xf32> to vector<32x32xf32>
    %cst_92 = arith.constant dense<0.000000e+00> : vector<8x32xf32>
    %236 = tpu.matmul %233, %235, %cst_92 {dimension_numbers = #tpu.dot_dimension_numbers<[1], [0], [0], [1], [0, 0, 1, 1], [], []>} : vector<8x32xf32>, vector<32x32xf32>, vector<8x32xf32> -> vector<8x32xf32>
    %237 = arith.addf %141, %236 : vector<8x32xf32>
    %c1_93 = arith.constant 1 : index
    %c0_94 = arith.constant 0 : index
    %c0_95 = arith.constant 0 : index
    %238 = vector.load %arg6[%c1_93, %c0_94, %c0_95] : memref<2x1x32xf32, #tpu.memory_space<vmem>>, vector<1x1x32xf32>
    %239 = vector.shape_cast %238 : vector<1x1x32xf32> to vector<1x32xf32>
    %240 = vector.broadcast %239 : vector<1x32xf32> to vector<8x32xf32>
    %241 = arith.addf %237, %240 : vector<8x32xf32>
    %cst_96 = arith.constant dense<0.000000e+00> : vector<8xf32>
    %242 = vector.multi_reduction <add>, %241, %cst_96 [1] : vector<8x32xf32> to vector<8xf32>
    %243 = vector.shape_cast %242 : vector<8xf32> to vector<8x1xf32>
    %cst_97 = arith.constant 3.200000e+01 : f32
    %244 = vector.broadcast %cst_97 : f32 to vector<8x1xf32>
    %245 = arith.divf %243, %244 : vector<8x1xf32>
    %246 = vector.broadcast %245 : vector<8x1xf32> to vector<8x32xf32>
    %247 = arith.subf %241, %246 : vector<8x32xf32>
    %248 = arith.mulf %247, %247 : vector<8x32xf32>
    %cst_98 = arith.constant dense<0.000000e+00> : vector<8xf32>
    %249 = vector.multi_reduction <add>, %248, %cst_98 [1] : vector<8x32xf32> to vector<8xf32>
    %250 = vector.shape_cast %249 : vector<8xf32> to vector<8x1xf32>
    %cst_99 = arith.constant 3.200000e+01 : f32
    %251 = vector.broadcast %cst_99 : f32 to vector<8x1xf32>
    %252 = arith.divf %250, %251 : vector<8x1xf32>
    %cst_100 = arith.constant 9.99999974E-6 : f32
    %253 = vector.broadcast %cst_100 : f32 to vector<8x1xf32>
    %254 = arith.addf %252, %253 : vector<8x1xf32>
    %255 = math.rsqrt %254 : vector<8x1xf32>
    %256 = vector.broadcast %255 : vector<8x1xf32> to vector<8x32xf32>
    %257 = arith.mulf %247, %256 : vector<8x32xf32>
    %c1_101 = arith.constant 1 : index
    %c0_102 = arith.constant 0 : index
    %c0_103 = arith.constant 0 : index
    %258 = vector.load %arg7[%c1_101, %c0_102, %c0_103] : memref<2x32x64xf32, #tpu.memory_space<vmem>>, vector<1x32x64xf32>
    %259 = vector.shape_cast %258 : vector<1x32x64xf32> to vector<32x64xf32>
    %cst_104 = arith.constant dense<0.000000e+00> : vector<8x64xf32>
    %260 = tpu.matmul %257, %259, %cst_104 {dimension_numbers = #tpu.dot_dimension_numbers<[1], [0], [0], [1], [0, 0, 1, 1], [], []>} : vector<8x32xf32>, vector<32x64xf32>, vector<8x64xf32> -> vector<8x64xf32>
    %c1_105 = arith.constant 1 : index
    %c0_106 = arith.constant 0 : index
    %c0_107 = arith.constant 0 : index
    %261 = vector.load %arg8[%c1_105, %c0_106, %c0_107] : memref<2x1x64xf32, #tpu.memory_space<vmem>>, vector<1x1x64xf32>
    %262 = vector.shape_cast %261 : vector<1x1x64xf32> to vector<1x64xf32>
    %263 = vector.broadcast %262 : vector<1x64xf32> to vector<8x64xf32>
    %264 = arith.addf %260, %263 : vector<8x64xf32>
    %cst_108 = arith.constant 0.000000e+00 : f32
    %265 = vector.broadcast %cst_108 : f32 to vector<8x64xf32>
    %266 = arith.maximumf %264, %265 : vector<8x64xf32>
    %c1_109 = arith.constant 1 : index
    %c0_110 = arith.constant 0 : index
    %c0_111 = arith.constant 0 : index
    %267 = vector.load %arg9[%c1_109, %c0_110, %c0_111] : memref<2x64x32xf32, #tpu.memory_space<vmem>>, vector<1x64x32xf32>
    %268 = vector.shape_cast %267 : vector<1x64x32xf32> to vector<64x32xf32>
    %cst_112 = arith.constant dense<0.000000e+00> : vector<8x32xf32>
    %269 = tpu.matmul %266, %268, %cst_112 {dimension_numbers = #tpu.dot_dimension_numbers<[1], [0], [0], [1], [0, 0, 1, 1], [], []>} : vector<8x64xf32>, vector<64x32xf32>, vector<8x32xf32> -> vector<8x32xf32>
    %270 = arith.addf %241, %269 : vector<8x32xf32>
    %c1_113 = arith.constant 1 : index
    %c0_114 = arith.constant 0 : index
    %c0_115 = arith.constant 0 : index
    %271 = vector.load %arg10[%c1_113, %c0_114, %c0_115] : memref<2x1x32xf32, #tpu.memory_space<vmem>>, vector<1x1x32xf32>
    %272 = vector.shape_cast %271 : vector<1x1x32xf32> to vector<1x32xf32>
    %273 = vector.broadcast %272 : vector<1x32xf32> to vector<8x32xf32>
    %274 = arith.addf %270, %273 : vector<8x32xf32>
    %cst_116 = arith.constant dense<0.000000e+00> : vector<8xf32>
    %275 = vector.multi_reduction <add>, %274, %cst_116 [1] : vector<8x32xf32> to vector<8xf32>
    %276 = vector.shape_cast %275 : vector<8xf32> to vector<8x1xf32>
    %cst_117 = arith.constant 3.200000e+01 : f32
    %277 = vector.broadcast %cst_117 : f32 to vector<8x1xf32>
    %278 = arith.divf %276, %277 : vector<8x1xf32>
    %279 = vector.broadcast %278 : vector<8x1xf32> to vector<8x32xf32>
    %280 = arith.subf %274, %279 : vector<8x32xf32>
    %281 = arith.mulf %280, %280 : vector<8x32xf32>
    %cst_118 = arith.constant dense<0.000000e+00> : vector<8xf32>
    %282 = vector.multi_reduction <add>, %281, %cst_118 [1] : vector<8x32xf32> to vector<8xf32>
    %283 = vector.shape_cast %282 : vector<8xf32> to vector<8x1xf32>
    %cst_119 = arith.constant 3.200000e+01 : f32
    %284 = vector.broadcast %cst_119 : f32 to vector<8x1xf32>
    %285 = arith.divf %283, %284 : vector<8x1xf32>
    %cst_120 = arith.constant 9.99999974E-6 : f32
    %286 = vector.broadcast %cst_120 : f32 to vector<8x1xf32>
    %287 = arith.addf %285, %286 : vector<8x1xf32>
    %288 = math.rsqrt %287 : vector<8x1xf32>
    %289 = vector.broadcast %288 : vector<8x1xf32> to vector<8x32xf32>
    %290 = arith.mulf %280, %289 : vector<8x32xf32>
    %c0_121 = arith.constant 0 : index
    %c0_122 = arith.constant 0 : index
    %c0_123 = arith.constant 0 : index
    %291 = vector.load %arg11[%c0_121, %c0_122, %c0_123] : memref<1x8x32xf32, #tpu.memory_space<vmem>>, vector<1x8x32xf32>
    %292 = vector.shape_cast %291 : vector<1x8x32xf32> to vector<8x32xf32>
    %293 = vector.shape_cast %290 : vector<8x32xf32> to vector<1x8x32xf32>
    tpu.vector_store %arg11[%c0_121, %c0_122, %c0_123], %293 {strides = array<i32>} : memref<1x8x32xf32, #tpu.memory_space<vmem>>, vector<1x8x32xf32>,
    return
  }
  func.func @transform_0(%arg0: i32) -> (i32, i32, i32) {
    %c0_i32 = arith.constant 0 : i32
    %c0_i32_0 = arith.constant 0 : i32
    %c0_i32_1 = arith.constant 0 : i32
    return %arg0, %c0_i32, %c0_i32_0 : i32, i32, i32
  }
  func.func @transform_1(%arg0: i32) -> (i32, i32, i32) {
    %c0_i32 = arith.constant 0 : i32
    %c0_i32_0 = arith.constant 0 : i32
    %c0_i32_1 = arith.constant 0 : i32
    return %arg0, %c0_i32, %c0_i32_0 : i32, i32, i32
  }
  func.func @transform_2(%arg0: i32) -> (i32, i32, i32) {
    %c0_i32 = arith.constant 0 : i32
    %c0_i32_0 = arith.constant 0 : i32
    %c0_i32_1 = arith.constant 0 : i32
    %c0_i32_2 = arith.constant 0 : i32
    return %c0_i32, %c0_i32_0, %c0_i32_1 : i32, i32, i32
  }
  func.func @transform_3(%arg0: i32) -> (i32, i32, i32) {
    %c0_i32 = arith.constant 0 : i32
    %c0_i32_0 = arith.constant 0 : i32
    %c0_i32_1 = arith.constant 0 : i32
    %c0_i32_2 = arith.constant 0 : i32
    return %c0_i32, %c0_i32_0, %c0_i32_1 : i32, i32, i32
  }
  func.func @transform_4(%arg0: i32) -> (i32, i32, i32) {
    %c0_i32 = arith.constant 0 : i32
    %c0_i32_0 = arith.constant 0 : i32
    %c0_i32_1 = arith.constant 0 : i32
    %c0_i32_2 = arith.constant 0 : i32
    return %c0_i32, %c0_i32_0, %c0_i32_1 : i32, i32, i32
  }
  func.func @transform_5(%arg0: i32) -> (i32, i32, i32) {
    %c0_i32 = arith.constant 0 : i32
    %c0_i32_0 = arith.constant 0 : i32
    %c0_i32_1 = arith.constant 0 : i32
    %c0_i32_2 = arith.constant 0 : i32
    return %c0_i32, %c0_i32_0, %c0_i32_1 : i32, i32, i32
  }
  func.func @transform_6(%arg0: i32) -> (i32, i32, i32) {
    %c0_i32 = arith.constant 0 : i32
    %c0_i32_0 = arith.constant 0 : i32
    %c0_i32_1 = arith.constant 0 : i32
    %c0_i32_2 = arith.constant 0 : i32
    return %c0_i32, %c0_i32_0, %c0_i32_1 : i32, i32, i32
  }
  func.func @transform_7(%arg0: i32) -> (i32, i32, i32) {
    %c0_i32 = arith.constant 0 : i32
    %c0_i32_0 = arith.constant 0 : i32
    %c0_i32_1 = arith.constant 0 : i32
    %c0_i32_2 = arith.constant 0 : i32
    return %c0_i32, %c0_i32_0, %c0_i32_1 : i32, i32, i32
  }
  func.func @transform_8(%arg0: i32) -> (i32, i32, i32) {
    %c0_i32 = arith.constant 0 : i32
    %c0_i32_0 = arith.constant 0 : i32
    %c0_i32_1 = arith.constant 0 : i32
    %c0_i32_2 = arith.constant 0 : i32
    return %c0_i32, %c0_i32_0, %c0_i32_1 : i32, i32, i32
  }
  func.func @transform_9(%arg0: i32) -> (i32, i32, i32) {
    %c0_i32 = arith.constant 0 : i32
    %c0_i32_0 = arith.constant 0 : i32
    %c0_i32_1 = arith.constant 0 : i32
    %c0_i32_2 = arith.constant 0 : i32
    return %c0_i32, %c0_i32_0, %c0_i32_1 : i32, i32, i32
  }
  func.func @transform_10(%arg0: i32) -> (i32, i32, i32) {
    %c0_i32 = arith.constant 0 : i32
    %c0_i32_0 = arith.constant 0 : i32
    %c0_i32_1 = arith.constant 0 : i32
    return %arg0, %c0_i32, %c0_i32_0 : i32, i32, i32
  }
}

</mosaic_0001>

<bundles_post_ra>
// kernel: encoder_forward.1
= control target key start
LH: loop header
LB: loop body
LE: loop exit
PB: predicated region body
PF: predicated region fallthrough
CT: control target
= control target key end

     0   :  { %s2558_s0 = inlined_call_operand.hbm [shape: f32[2,8,32], index: 0, kind: input, shape index: {}]   ;;  %s2559_s1 = inlined_call_operand.hbm [shape: f32[2,1,8], index: 1, kind: input, shape index: {}]   ;;  %s2560_s2 = inlined_call_operand.vmem [shape: f32[2,32,96], index: 2, kind: input, shape index: {}]   ;;  %s2561_s3 = inlined_call_operand.vmem [shape: f32[2,1,96], index: 3, kind: input, shape index: {}]   ;;  %s2562_s4 = inlined_call_operand.vmem [shape: f32[2,32,32], index: 4, kind: input, shape index: {}]   ;;  %s2563_s5 = inlined_call_operand.hbm [shape: f32[2,1,32], index: 5, kind: input, shape index: {}]   ;;  %s2564_s6 = inlined_call_operand.vmem [shape: f32[2,32,64], index: 6, kind: input, shape index: {}]   ;;  %s2565_s7 = inlined_call_operand.hbm [shape: f32[2,1,64], index: 7, kind: input, shape index: {}]   ;;  %s2566_s8 = inlined_call_operand.vmem [shape: f32[2,64,32], index: 8, kind: input, shape index: {}]   ;;  %s2567_s9 = inlined_call_operand.hbm [shape: f32[2,1,32], index: 9, kind: input, shape index: {}]   ;;  %s2568_s10 = inlined_call_operand.hbm [shape: f32[2,8,32], index: 10, kind: output, shape index: {}]  }
   0x1   :  { %2581 = sst [smem:[#allocation23_spill]] %s2563_s5 }
   0x2   :  { %2582 = sst [smem:[#allocation24_spill]] %s2565_s7 }
   0x3   :  { %2583 = sst [smem:[#allocation25_spill]] %s2567_s9 }
   0x4   :  { %15 = vsyncpa [#allocation3], 0 }
   0x5   :  { %17 = vsyncpa [#allocation3 + $0x1], 0 }
   0x6   :  { %18 = vsyncpa [#allocation6], 0 }
   0x7   :  { %20 = vsyncpa [#allocation6 + $0x1], 0 }
   0x8   :  { %21 = vsyncpa [#allocation9], 0 }
   0x9   :  { %22 = vsyncpa [#allocation4], 0 }
   0xa   :  { %24 = vsyncpa [#allocation4 + $0x1], 0  ;;  %s2075_s13 = smov 0   ;;  %s2077_s14 = smov 0  }
   0xb   :  { %s2079_s15 = smov 0   ;;  %s2081_s16 = smov 0  }
   0xc LB: > { %2584 = sst [smem:[#allocation17_spill]] %s1985_s13  ;;  %s2099_s20 = sadd.s32 4294967295, %s1997_s16   ;;  %s1997_s16 = sphi %s2081_s16, %s2610_s16   ;;  %s1993_s15 = sphi %s2079_s15, %s2615_s15   ;;  %s1989_s14 = sphi %s2077_s14, %s2614_s14   ;;  %s1985_s13 = sphi %s2075_s13, %s2613_s13  }
   0xd   : > { %2585 = sst [smem:[#allocation18_spill]] %s1993_s15  ;;  %p1547_p0 = scmp.ge.s32.totalorder %s1997_s16, 1 }
   0xe   : > { %2586 = sst [smem:[#allocation19_spill]] %s1997_s16  ;;  %p51_p1 = scmp.eq.s32.totalorder %s2099_s20, 0 }
   0xf   : > { %s2587_s5 = sld [smem:[#allocation23_spill]]  ;;  %p281_p2 = scmp.lt.s32.totalorder %s1997_s16, 3 }
  0x10   : > { %s1999_s22 = smov [#allocation7]   ;;  %s2589_s7 = sld [smem:[#allocation24_spill]] }
  0x11   : > { %p2104_p3 = pnand %p1547_p0, %p281_p2  ;;  %s303_s23 = sshll.u32 %s1999_s22, 4  ;;  %s304_s23 = int_to_ptr.vmem [resolvable:$true] %s303_s23 }
  0x12   : > { %s2591_s9 = sld [smem:[#allocation25_spill]]  ;;  %s2000_s11 = smov [#allocation8]  }
  0x13   : > { %p1635_p4 = pneg %p2104_p3  ;;  %s320_s12 = sshll.u32 %s2000_s11, 4  ;;  %s321_s12 = int_to_ptr.vmem [resolvable:$true] %s320_s12 }
  0x14   : > { %s2001_s17 = smov 16   ;;  %s2002_s18 = smov 1  }
  0x15   : > { %s301_s19 = sshll.u32 %s2587_s5, 4  ;;  %p2116_p6 = pnand %p1635_p4, %p51_p1  ;;  %s302_s19 = int_to_ptr.hbm [resolvable:$true] %s301_s19 }
  0x16   : > { %s318_s26 = sshll.u32 %s2589_s7, 4  ;;  %s2003_s22 = smov [#allocation10]   ;;  %s319_s26 = int_to_ptr.hbm [resolvable:$true] %s318_s26 }
  0x17   : > { %1638 = dma.hbm_to_vmem [thread:$0]  (!%p2116_p6), %s302_s19, 32, %s304_s23, [#allocation6], %s2001_s17, %s2001_s17, %s2002_s18  }
  0x18   : > { %s335_s30 = sshll.u32 %s2591_s9, 4  ;;  %s337_s24 = sshll.u32 %s2003_s22, 4  ;;  %s336_s30 = int_to_ptr.hbm [resolvable:$true] %s335_s30  ;;  %s338_s24 = int_to_ptr.vmem [resolvable:$true] %s337_s24 }
  0x19   : > { %1641 = dma.hbm_to_vmem [thread:$0]  (!%p2116_p6), %s319_s26, 32, %s321_s12, [#allocation9], %s2001_s17, %s2001_s17, %s2002_s18  }
  0x1a   : > { %1644 = dma.hbm_to_vmem [thread:$0]  (!%p2116_p6), %s336_s30, 32, %s338_s24, [#allocation9], %s2001_s17, %s2001_s17, %s2002_s18  }
  0x1b   : > { %s1546_s25 = sadd.s32 4294967294, %s1997_s16   ;;  %s2131_s28 = sadd.s32 1, %s1997_s16  }
  0x1c   : > { %2592 = sst [smem:[#allocation20_spill]] %s2131_s28  ;;  %s37_s29 = sadd.s32 1, %s1993_s15 }
  0x1d   : > { %s34_s19 = ssub.s32 %s1997_s16, %s2131_s28  ;;  %p44_p7 = scmp.ne.s32.totalorder %s1993_s15, %s1989_s14 }
  0x1e   : > { %p35_p8 = scmp.eq.s32.totalorder %s34_s19, 0  ;;  %p45_p9 = scmp.eq.s32.totalorder %s1997_s16, 0 }
  0x1f   : > { %p50_p10 = scmp.ne.s32.totalorder %s1989_s14, %s1985_s13  ;;  %p268_p11 = scmp.eq.s32.totalorder %s2099_s20, 1 }
  0x20   : > { %s2143_s23 = scalar_select %p35_p8, %s1993_s15, %s37_s29  }
  0x21   : > { %p2145_p12 = por %p45_p9, %p44_p7  ;;  %p2151_p13 = por %p51_p1, %p50_p10 }
  0x22   : > { %2593 = sst [smem:[#allocation21_spill]] %s2143_s23  ;;  %p2155_p0 = por %p268_p11, %p44_p7 }
  0x23   : > { %p274_p2 = scmp.eq.s32.totalorder %s1546_s25, 1  ;;  %p1659_p4 = scmp.lt.s32.totalorder %s1997_s16, 2 }
  0x24   : > { %s2161_s11 = sand.u32 1, %s1993_s15   ;;  %s1553_s18 = sshll.u32 %s1997_s16, 3 }
  0x25   : > { %p2163_p6 = por %p274_p2, %p50_p10  ;;  %s1552_s17 = sshll.u32 %s2161_s11, 3 }
  0x26   : > { %s359_s29 = scalar_lea.hbm %s2558_s0, %s1553_s18  ;;  %s355_s5 = scalar_lea.vmem [#allocation2], %s1552_s17 }
  0x27   : > { %s2597_s12 = scalar_select %p2163_p6, 1, 0 }
  0x28   : > { %s361_s19 = sshll.u32 %s359_s29, 4  ;;  %s363_s7 = sshll.u32 %s355_s5, 4  ;;  %s362_s19 = int_to_ptr.hbm [resolvable:$true] %s361_s19  ;;  %s364_s7 = int_to_ptr.vmem [resolvable:$true] %s363_s7 }
  0x29   : > { %2598 = sst [smem:[#allocation22_spill]] %s2597_s12  ;;  %p2174_p7 = pnand %p1659_p4, %p2145_p12 }
  0x2a   : > { %s370_s9 = sand.u32 1, %s1997_s16   ;;  %s376_s28 = scalar_lea.hbm %s2559_s1, %s1997_s16 }
  0x2b   : > { %s352_s12 = scalar_lea.sflag [#allocation3], %s2161_s11  ;;  %s1859_s22 = sshra.s32 %s362_s19, 4  ;;  %s1860_s22 = int_to_ptr.hbm [resolvable:$true] %s1859_s22 }
  0x2c   : > { %s1861_s18 = scalar_lea.hbm %s1860_s22, 8  ;;  %p1863_p9 = pneg %p2174_p7 }
  0x2d   : > { %p1862_p8 = scmp.ne.s32.totalorder %s1860_s22, %s1861_s18  ;;  %s1866_s17 = scalar_lea.hbm %s2558_s0, 16 }
  0x2e   : > { %p1867_p12 = scmp.lt.s32.totalorder %s1860_s22, %s2558_s0  ;;  %p1868_p2 = scmp.lt.s32.totalorder %s1866_s17, %s1861_s18 }
  0x2f   : > { %p1864_p10 = pnand %p1863_p9, %p1862_p8 }
  0x30   : > { %p1869_p4 = por %p1868_p2, %p1867_p12 }
  0x31   : > { %p1865_p11 = pneg %p1864_p10 }
  0x33   : > { %p1870_p5 = pnand %p1869_p4, %p1865_p11 }
  0x35   : > { %1873 = shalt.err (!%p1870_p5)
}
  0x36   : > { %1648 = dma.hbm_to_vmem [thread:$0]  (!%p2174_p7), %s362_s19, 128, %s364_s7, %s352_s12  }
  0x37   : > { %s378_s15 = sshll.u32 %s376_s28, 4  ;;  %s373_s23 = scalar_lea.vmem [#allocation5], %s2161_s11  ;;  %s379_s15 = int_to_ptr.hbm [resolvable:$true] %s378_s15 }
  0x38   : > { %s380_s16 = sshll.u32 %s373_s23, 4  ;;  %s371_s5 = scalar_lea.sflag [#allocation6], %s370_s9  ;;  %s381_s16 = int_to_ptr.vmem [resolvable:$true] %s380_s16 }
  0x39   : > { %s1889_s26 = sshra.s32 %s379_s15, 4  ;;  %s1896_s17 = scalar_lea.hbm %s2559_s1, 2  ;;  %s1890_s26 = int_to_ptr.hbm [resolvable:$true] %s1889_s26 }
  0x3a   : > { %s1891_s13 = scalar_lea.hbm %s1890_s26, 1  ;;  %p1897_p5 = scmp.lt.s32.totalorder %s1890_s26, %s2559_s1 }
  0x3b   : > { %p1892_p8 = scmp.ne.s32.totalorder %s1890_s26, %s1891_s13  ;;  %p1898_p12 = scmp.lt.s32.totalorder %s1896_s17, %s1891_s13 }
  0x3d   : > { %p1894_p10 = pnand %p1892_p8, %p1863_p9  ;;  %p1899_p2 = por %p1898_p12, %p1897_p5 }
  0x3f   : > { %p1895_p11 = pneg %p1894_p10 }
  0x41   : > { %p1900_p4 = pnand %p1899_p2, %p1895_p11 }
  0x43   : > { %1903 = shalt.err (!%p1900_p4)
}
  0x44   : > { %1651 = dma.hbm_to_vmem [thread:$0]  (!%p2174_p7), %s379_s15, 16, %s381_s16, %s371_s5  }
  0x45   : > { %389 = sbr.rel (%p2104_p3) target bundleno = 4785 (0x12b1), region = 60  ;;  %s2212_s9 = sand.u32 (!%p2104_p3), 1, %s1989_s14  }
  0x46   : > { %s2575_s28 = sshll.u32 (!%p2104_p3), %s2212_s9, 3  ;;  %s392_s11 = scalar_lea.sflag (!%p2104_p3), [#allocation3], %s2212_s9 }
  0x47   : > { %s395_s13 = scalar_lea.vmem (!%p2104_p3), [#allocation2], %s2575_s28 }
  0x4a   : > { %1964 = dma.done.wait (%p2151_p13), %s392_s11, 128  }
  0x4b   : > { %1966 = vsyncadd (%p2151_p13), %s392_s11, 4294967168  ;;  %s401_s16 = sand.u32 1, %s2099_s20   ;;  %s404_s12 = scalar_lea.vmem [#allocation5], %s2212_s9 }
  0x4c   : > { %s402_s21 = scalar_lea.sflag [#allocation6], %s401_s16 }
  0x4d   : > { %1968 = dma.done.wait (%p2151_p13), %s402_s21, 16  }
  0x4e   : > { %1970 = vsyncadd (%p2151_p13), %s402_s21, 4294967280 }
  0x4f   : > { %1972 = dma.done.wait (%p51_p1), [#allocation6], 32  }
  0x50   : > { %1974 = vsyncadd (%p51_p1), [#allocation6], 4294967264 }
  0x51   : > { %1976 = dma.done.wait (%p51_p1), [#allocation9], 64  }
  0x52   : > { %1978 = vsyncadd (%p51_p1), [#allocation9], 4294967232  ;;  %vm465_vm0 = vcmask 261120   ;;  %v2236_v0 = vld [vmem:[%s395_s13] sm:$0xff]  ;;  %v2004_v2 = vmov 32.0   ;;  %v498_v14 = vld [vmem:[%s2560_s2 + $0x18] sm:$0xff] }
  0x53   : > { %v466_v1 = vsel %vm465_vm0, %v2236_v0, 0.0  ;;  %1725 = vrcp.f32 %v2004_v2  ;;  %518 = vmatpush.msra.mxu0 %v498_v14  ;;  %v497_v15 = vld [vmem:[%s2560_s2 + $0x10] sm:$0xff]  ;;  %v496_v16 = vld [vmem:[%s2560_s2 + $0x8] sm:$0xff]  ;;  %v495_v17 = vld [vmem:[%s2560_s2] sm:$0xff]  ;;  %s2005_s17 = smov 88   ;;  %s2006_s24 = smov 64  }
  0x54   : > { %467 = vadd.xlane.f32.xlu0 %v466_v1  ;;  %v1717_v29 = vld [vmem:[%s2561_s3] ss:$0 sm:$0xff]  ;;  %s2007_s7 = smov 96   ;;  %s2008_s11 = smov 80   ;;  %vm532_vm5 = vcmask 64512   ;;  %vm802_vm7 = vcmask 130048  }
  0x55   : > { %519 = vmatpush.msra.mxu0 %v497_v15  ;;  %s2009_s13 = smov 120   ;;  %s2010_s16 = smov 112   ;;  %v462_v39 = vld [vmem:[%s404_s12] sm:$0x1]  ;;  %v2012_v40 = vmov -1e+29  }
  0x56   : > { %s2011_s21 = smov 72   ;;  %vm463_vm6 = vcmp.ne.f32.partialorder %v462_v39, 0.0  ;;  %s2578_s27 = smov 48   ;;  %vm804_vm8 = vcmask 195584   ;;  %vm901_vm12 = vcmask 523264  }
  0x57   : > { %520 = vmatpush.msra.mxu0 %v496_v16  ;;  %v464_v41 = vsel %vm463_vm6, 0.0, %v2012_v40  ;;  %s2014_s12 = smov 104   ;;  %s2580_s19 = smov 40  }
  0x58   : > { %v2287_v42 = vperm.slane %v464_v41, 0  ;;  %s2016_s25 = smov 56   ;;  %s2576_s29 = smov 16  }
  0x59   : > { %v1726_v3 = vpop.eup %1725  ;;  %521 = vmatpush.msra.mxu0 %v495_v17  ;;  %s2577_s15 = smov 8   ;;  %s2579_s23 = smov 24  }
  0x5a   : > { %v470_v4 = vmul.f32 32.0, %v1726_v3  ;;  %vm474_vm1 = vweird.f32 %v1726_v3  ;;  %s1939_s22 = scalar_lea.hbm %s2568_s10, 16 }
  0x5c   : > { %v471_v5 = vsub.f32 1.0, %v470_v4 }
  0x5e   : > { %v472_v6 = vmul.f32 %v1726_v3, %v471_v5 }
  0x60   : > { %v473_v7 = vadd.f32 %v1726_v3, %v472_v6 }
  0x62   : > { %v2240_v8 = vsel %vm474_vm1, %v1726_v3, %v473_v7 }
  0xc7   : > { %v468_v9 = vpop.xlane.xlu0 %467 }
  0xc8   : > { %v476_v10 = vmul.f32 %v2240_v8, %v468_v9 }
  0xca   : > { %v477_v11 = vsub.f32 %v2236_v0, %v476_v10 }
  0xcc   : > { %v478_v12 = vmul.f32 %v477_v11, %v477_v11 }
  0xce   : > { %v479_v13 = vsel %vm465_vm0, %v478_v12, 0.0 }
  0xcf   : > { %480 = vadd.xlane.f32.xlu0 %v479_v13 }
 0x142   : > { %v481_v18 = vpop.xlane.xlu0 %480 }
 0x143   : > { %v482_v19 = vmul.f32 %v481_v18, %v2240_v8 }
 0x145   : > { %v483_v20 = vadd.f32 1e-05, %v482_v19 }
 0x147   : > { %1727 = vrsqrt.f32 %v483_v20  ;;  %vm490_vm3 = vweird.f32 %v483_v20 }
 0x14d   : > { %v1728_v21 = vpop.eup %1727 }
 0x14e   : > { %v485_v22 = vmul.f32 %v1728_v21, %v483_v20  ;;  %vm491_vm2 = vweird.f32 %v1728_v21 }
 0x14f   : > { %vm492_vm4 = vmor %vm490_vm3, %vm491_vm2 }
 0x150   : > { %v486_v23 = vmul.f32 %v1728_v21, %v485_v22 }
 0x152   : > { %v487_v24 = vmul.f32 0.5, %v486_v23 }
 0x154   : > { %v488_v25 = vsub.f32 1.5, %v487_v24 }
 0x156   : > { %v489_v26 = vmul.f32 %v1728_v21, %v488_v25 }
 0x158   : > { %v493_v27 = vsel %vm492_vm4, %v1728_v21, %v489_v26 }
 0x159   : > { %v494_v28 = vmul.f32 %v493_v27, %v477_v11 }
 0x15b   : > { %1560 = vmatmul.msk.f32.vlgmr.msra.gmra.mxu0 %vm465_vm0, %v494_v28 }
 0x1d8   : > { %v523_v30 = vpop.f32.mrf.mxu0 }
 0x1d9   : > { %v2262_v31 = vadd.f32 %v1717_v29, %v523_v30 }
 0x1db   : > { %596 = vrot.lane.b32.xlu0 %v2262_v31, %s2005_s17  ;;  %568 = vrot.lane.b32.xlu2 %v2262_v31, %s2006_s24 }
 0x1dc   : > { %530 = vrot.lane.b32.xlu1 %v2262_v31, %s2007_s7 }
 0x1e3   : > { %661 = vrot.lane.b32.xlu0 %v2262_v31, %s2008_s11  ;;  %594 = vrot.lane.b32.xlu2 %v2262_v31, %s2009_s13 }
 0x1eb   : > { %659 = vrot.lane.b32.xlu0 %v2262_v31, %s2010_s16  ;;  %726 = vrot.lane.b32.xlu2 %v2262_v31, %s2011_s21 }
 0x235   : > { %v569_v32 = vpop.permute.xlu2 %568 }
 0x236   : > { %589 = vmatpush.msra.mxu3 %v569_v32 }
 0x23d   : > { %v595_v33 = vpop.permute.xlu2 %594 }
 0x245   : > { %v727_v34 = vpop.permute.xlu2 %726 }
 0x246   : > { %1570 = vmatpush.xpose.msk.msrb.mxu0 %vm532_vm5, %v727_v34  ;;  %v808_v34 = vld [vmem:[%s2562_s4 + $0x10] sm:$0xff] }
 0x24d   : > { %v597_v35 = vpop.permute.xlu0 %596 }
 0x24e   : > { %v531_v36 = vpop.permute.xlu1 %530  ;;  %1564 = vmatpush.xpose.msk.msrb.mxu3 %vm532_vm5, %v597_v35  ;;  %v807_v35 = vld [vmem:[%s2562_s4 + $0x8] sm:$0xff] }
 0x24f   : > { %1561 = vmatpush.xpose.msk.msra.mxu1 %vm532_vm5, %v531_v36  ;;  %v806_v36 = vld [vmem:[%s2562_s4] sm:$0xff] }
 0x252   : > { %1562 = vmatmul.msk.f32.vlgmr.msra.gmra.mxu1 %vm532_vm5, %v2262_v31 }
 0x255   : > { %v662_v37 = vpop.permute.xlu0 %661 }
 0x256   : > { %1567 = vmatpush.xpose.msk.msrb.mxu1 %vm532_vm5, %v662_v37 }
 0x25d   : > { %v660_v38 = vpop.permute.xlu0 %659 }
 0x25e   : > { %1568 = vmatmul.msk.f32.vlgmr.msrb.gmra.mxu1 %vm532_vm5, %v660_v38 }
 0x2cf   : > { %v554_v43 = vpop.f32.mrf.mxu1 }
 0x2d0   : > { %v555_v44 = vadd.f32 %v554_v43, %v2287_v42 }
 0x2d2   : > { %v557_v45 = vsel %vm532_vm5, %v555_v44, -inf }
 0x2d3   : > { %558 = vmax.xlane.f32.xlu1 %v557_v45 }
 0x2db   : > { %v684_v46 = vpop.f32.mrf.mxu1 }
 0x2dc   : > { %v685_v47 = vadd.f32 %v684_v46, %v2287_v42 }
 0x2de   : > { %v687_v48 = vsel %vm532_vm5, %v685_v47, -inf }
 0x2df   : > { %688 = vmax.xlane.f32.xlu0 %v687_v48 }
 0x2f3   : > { %698 = vrot.lane.b32.xlu0 %v2262_v31, %s2578_s27 }
 0x346   : > { %v559_v49 = vpop.xlane.xlu1 %558 }
 0x347   : > { %v560_v50 = vsub.f32 %v555_v44, %v559_v49  ;;  %v1718_v44 = vld [vmem:[#allocation7] ss:$0 sm:$0xff] }
 0x349   : > { %v561_v51 = vmul.f32 1.442695, %v560_v50 }
 0x34b   : > { %1729 = vpow2.f32 %v561_v51 }
 0x351   : > { %v1730_v52 = vpop.eup %1729 }
 0x352   : > { %v563_v53 = vsel %vm532_vm5, %v1730_v52, 0.0  ;;  %v689_v55 = vpop.xlane.xlu0 %688 }
 0x353   : > { %564 = vadd.xlane.f32.xlu2 %v563_v53  ;;  %v690_v1 = vsub.f32 %v685_v47, %v689_v55  ;;  %v862_v55 = vld [vmem:[%s2564_s6 + $0x8] sm:$0xff] }
 0x355   : > { %v691_v2 = vmul.f32 1.442695, %v690_v1 }
 0x365   : > { %v699_v59 = vpop.permute.xlu0 %698 }
 0x36b   : > { %724 = vrot.lane.b32.xlu2 %v2262_v31, %s2014_s12 }
 0x3c6   : > { %v565_v54 = vpop.xlane.xlu2 %564 }
 0x3c7   : > { %1731 = vrcp.f32 %v565_v54  ;;  %v864_v54 = vld [vmem:[%s2564_s6 + $0x18] sm:$0xff] }
 0x3c8   : > { %1733 = vpow2.f32 %v691_v2 }
 0x3cd   : > { %v1732_v56 = vpop.eup %1731 }
 0x3ce   : > { %v725_v57 = vpop.permute.xlu2 %724  ;;  %v567_v58 = vmul.f32 %v1732_v56, %v1730_v52  ;;  %v1734_v6 = vpop.eup %1733  ;;  %v861_v56 = vld [vmem:[%s2564_s6] sm:$0xff] }
 0x3cf   : > { %1571 = vmatmul.msk.f32.vlgmr.msrb.gmra.mxu0 %vm532_vm5, %v725_v57  ;;  %v693_v7 = vsel %vm532_vm5, %v1734_v6, 0.0  ;;  %v900_v57 = vld [vmem:[%s2566_s8 + $0x38] sm:$0xff] }
 0x3d0   : > { %1563 = vmatmul.msk.f32.vlgmr.msra.gmra.mxu3 %vm532_vm5, %v567_v58  ;;  %v899_v58 = vld [vmem:[%s2566_s8 + $0x30] sm:$0xff]  ;;  %913 = vmatpush.msra.mxu0 %v900_v57 }
 0x3d1   : > { %719 = vmatpush.msra.mxu3 %v699_v59  ;;  %v898_v59 = vld [vmem:[%s2566_s8 + $0x28] sm:$0xff] }
 0x3d2   : > { %914 = vmatpush.msra.mxu0 %v899_v58 }
 0x3d4   : > { %915 = vmatpush.msra.mxu0 %v898_v59 }
 0x3d8   : > { %1565 = vmatmul.msk.f32.vlgmr.msrb.gmra.mxu3 %vm532_vm5, %v595_v33  ;;  %v809_v33 = vld [vmem:[%s2562_s4 + $0x18] sm:$0xff] }
 0x3d9   : > { %825 = vmatpush.msra.mxu1 %v809_v33  ;;  %884 = vmatpush.msrb.mxu3 %v864_v54 }
 0x3db   : > { %826 = vmatpush.msra.mxu1 %v808_v34 }
 0x3dd   : > { %827 = vmatpush.msra.mxu1 %v807_v35 }
 0x3df   : > { %828 = vmatpush.msra.mxu1 %v806_v36 }
 0x44c   : > { %v749_v60 = vpop.f32.mrf.mxu0 }
 0x44d   : > { %v750_v61 = vadd.f32 %v749_v60, %v2287_v42  ;;  %v897_v60 = vld [vmem:[%s2566_s8 + $0x20] sm:$0xff] }
 0x44e   : > { %916 = vmatpush.msra.mxu0 %v897_v60 }
 0x44f   : > { %v752_v62 = vsel %vm532_vm5, %v750_v61, -inf }
 0x450   : > { %753 = vmax.xlane.f32.xlu2 %v752_v62 }
 0x453   : > { %v2303_v63 = vpop.f32.mrf.mxu3 }
 0x45b   : > { %v619_v3 = vpop.f32.mrf.mxu3 }
 0x45c   : > { %v620_v4 = vadd.f32 %v619_v3, %v2287_v42 }
 0x45e   : > { %v622_v5 = vsel %vm532_vm5, %v620_v4, -inf }
 0x45f   : > { %623 = vmax.xlane.f32.xlu1 %v622_v5 }
 0x467   : > { %694 = vadd.xlane.f32.xlu1 %v693_v7 }
 0x468   : > { %763 = vrot.lane.b32.xlu2 %v2262_v31, %s2580_s19 }
 0x4c3   : > { %v754_v9 = vpop.xlane.xlu2 %753 }
 0x4c4   : > { %v755_v10 = vsub.f32 %v750_v61, %v754_v9  ;;  %v896_v61 = vld [vmem:[%s2566_s8 + $0x18] sm:$0xff] }
 0x4c5   : > { %917 = vmatpush.msra.mxu0 %v896_v61 }
 0x4c6   : > { %v756_v11 = vmul.f32 1.442695, %v755_v10 }
 0x4c8   : > { %1735 = vpow2.f32 %v756_v11  ;;  %v895_v11 = vld [vmem:[%s2566_s8 + $0x10] sm:$0xff] }
 0x4c9   : > { %918 = vmatpush.msra.mxu0 %v895_v11 }
 0x4cb   : > { %v764_v28 = vpop.permute.xlu2 %763 }
 0x4ce   : > { %v1736_v12 = vpop.eup %1735 }
 0x4cf   : > { %v758_v13 = vsel %vm532_vm5, %v1736_v12, 0.0 }
 0x4d0   : > { %759 = vadd.xlane.f32.xlu1 %v758_v13  ;;  %v893_v13 = vld [vmem:[%s2566_s8] sm:$0xff] }
 0x4d2   : > { %v624_v14 = vpop.xlane.xlu1 %623 }
 0x4d3   : > { %v625_v15 = vsub.f32 %v620_v4, %v624_v14  ;;  %v1719_v14 = vld [vmem:[#allocation8] ss:$0 sm:$0xff] }
 0x4d5   : > { %v626_v16 = vmul.f32 1.442695, %v625_v15 }
 0x4d7   : > { %1737 = vpow2.f32 %v626_v16 }
 0x4da   : > { %v695_v17 = vpop.xlane.xlu1 %694 }
 0x4db   : > { %1739 = vrcp.f32 %v695_v17 }
 0x4dd   : > { %v1738_v18 = vpop.eup %1737 }
 0x4de   : > { %v628_v19 = vsel %vm532_vm5, %v1738_v18, 0.0 }
 0x4df   : > { %629 = vadd.xlane.f32.xlu1 %v628_v19 }
 0x4e1   : > { %v1740_v20 = vpop.eup %1739 }
 0x4e2   : > { %v697_v21 = vmul.f32 %v1740_v20, %v1734_v6 }
 0x4e4   : > { %1569 = vmatmul.msk.f32.vlgmr.msra.gmra.mxu3 %vm532_vm5, %v697_v21 }
 0x4f8   : > { %633 = vrot.lane.b32.xlu1 %v2262_v31, %s2016_s25 }
 0x543   : > { %v760_v22 = vpop.xlane.xlu1 %759 }
 0x552   : > { %v630_v23 = vpop.xlane.xlu1 %629 }
 0x553   : > { %1741 = vrcp.f32 %v630_v23 }
 0x554   : > { %1743 = vrcp.f32 %v760_v22 }
 0x559   : > { %v1742_v24 = vpop.eup %1741 }
 0x55a   : > { %v632_v27 = vmul.f32 %v1742_v24, %v1738_v18  ;;  %v1744_v29 = vpop.eup %1743  ;;  %v1720_v18 = vld [vmem:[#allocation10] ss:$0 sm:$0xff] }
 0x55b   : > { %v762_v30 = vmul.f32 %v1744_v29, %v1736_v12  ;;  %v894_v12 = vld [vmem:[%s2566_s8 + $0x8] sm:$0xff]  ;;  %v1578_v29 = vld [vmem:[%s2560_s2 + $0x30] sm:$0xff] }
 0x55c   : > { %919 = vmatpush.msra.mxu0 %v894_v12 }
 0x55e   : > { %920 = vmatpush.msra.mxu0 %v893_v13 }
 0x567   : > { %v721_v25 = vpop.f32.mrf.mxu3 }
 0x568   : > { %794 = vrot.lane.b32.xlu0 %v721_v25, %s2576_s29 }
 0x56a   : > { %v634_v26 = vpop.permute.xlu1 %633 }
 0x56b   : > { %654 = vmatpush.msra.mxu2 %v634_v26 }
 0x56c   : > { %1566 = vmatmul.msk.f32.vlgmr.msra.gmra.mxu2 %vm532_vm5, %v632_v27 }
 0x56d   : > { %784 = vmatpush.msrb.mxu2 %v764_v28  ;;  %v1579_v28 = vld [vmem:[%s2560_s2 + $0x38] sm:$0xff] }
 0x56f   : > { %978 = vmatpush.msra.mxu2 %v1579_v28 }
 0x571   : > { %979 = vmatpush.msra.mxu2 %v1578_v29 }
 0x574   : > { %1572 = vmatmul.msk.f32.vlgmr.msrb.gmra.mxu2 %vm532_vm5, %v762_v30  ;;  %v1577_v30 = vld [vmem:[%s2560_s2 + $0x28] sm:$0xff] }
 0x575   : > { %980 = vmatpush.msra.mxu2 %v1577_v30 }
 0x5da   : > { %v795_v39 = vpop.permute.xlu0 %794 }
 0x5ef   : > { %v656_v31 = vpop.f32.mrf.mxu2 }
 0x5f0   : > { %790 = vrot.lane.b32.xlu1 %v656_v31, %s2577_s15  ;;  %v1576_v31 = vld [vmem:[%s2560_s2 + $0x20] sm:$0xff]  ;;  %s1614_s15 = sshll.u32 %s2099_s20, 3  ;;  %s1414_s20 = scalar_lea.sflag [#allocation4], %s2212_s9 }
 0x5f1   : > { %981 = vmatpush.msra.mxu2 %v1576_v31 }
 0x5f7   : > { %v786_v32 = vpop.f32.mrf.mxu2 }
 0x5f8   : > { %798 = vrot.lane.b32.xlu1 %v786_v32, %s2579_s23 }
 0x662   : > { %v791_v37 = vpop.permute.xlu1 %790 }
 0x663   : > { %v801_v38 = vsel %vm532_vm5, %v2303_v63, %v791_v37 }
 0x664   : > { %v803_v40 = vsel %vm802_vm7, %v801_v38, %v795_v39 }
 0x66a   : > { %v799_v41 = vpop.permute.xlu1 %798 }
 0x66b   : > { %v805_v43 = vsel %vm804_vm8, %v803_v40, %v799_v41 }
 0x66c   : > { %1573 = vmatmul.msk.f32.vlgmr.msra.gmra.mxu1 %vm465_vm0, %v805_v43 }
 0x6e9   : > { %v830_v45 = vpop.f32.mrf.mxu1 }
 0x6ea   : > { %v833_v46 = vadd.f32 %v830_v45, %v2236_v0  ;;  %v863_v0 = vld [vmem:[%s2564_s6 + $0x10] sm:$0xff] }
 0x6eb   : > { %885 = vmatpush.msrb.mxu3 %v863_v0 }
 0x6ec   : > { %v838_v47 = vadd.f32 %v1718_v44, %v833_v46  ;;  %v1721_v44 = vld [vmem:[%s2561_s3 + $0x1] ss:$0 sm:$0xff] }
 0x6ed   : > { %886 = vmatpush.msrb.mxu3 %v862_v55 }
 0x6ee   : > { %v839_v48 = vsel %vm465_vm0, %v838_v47, 0.0 }
 0x6ef   : > { %840 = vadd.xlane.f32.xlu2 %v839_v48  ;;  %887 = vmatpush.msrb.mxu3 %v861_v56 }
 0x762   : > { %v841_v49 = vpop.xlane.xlu2 %840 }
 0x763   : > { %v842_v50 = vmul.f32 %v841_v49, %v2240_v8 }
 0x765   : > { %v843_v51 = vsub.f32 %v838_v47, %v842_v50 }
 0x767   : > { %v844_v52 = vmul.f32 %v843_v51, %v843_v51 }
 0x769   : > { %v845_v53 = vsel %vm465_vm0, %v844_v52, 0.0 }
 0x76a   : > { %846 = vadd.xlane.f32.xlu0 %v845_v53 }
 0x7dd   : > { %v847_v62 = vpop.xlane.xlu0 %846 }
 0x7de   : > { %v848_v63 = vmul.f32 %v847_v62, %v2240_v8 }
 0x7e0   : > { %v849_v1 = vadd.f32 1e-05, %v848_v63 }
 0x7e2   : > { %1745 = vrsqrt.f32 %v849_v1  ;;  %vm856_vm10 = vweird.f32 %v849_v1 }
 0x7e8   : > { %v1746_v2 = vpop.eup %1745 }
 0x7e9   : > { %v851_v3 = vmul.f32 %v1746_v2, %v849_v1  ;;  %vm857_vm9 = vweird.f32 %v1746_v2 }
 0x7ea   : > { %vm858_vm11 = vmor %vm856_vm10, %vm857_vm9 }
 0x7eb   : > { %v852_v4 = vmul.f32 %v1746_v2, %v851_v3 }
 0x7ed   : > { %v853_v5 = vmul.f32 0.5, %v852_v4 }
 0x7ef   : > { %v854_v6 = vsub.f32 1.5, %v853_v5 }
 0x7f1   : > { %v855_v7 = vmul.f32 %v1746_v2, %v854_v6 }
 0x7f3   : > { %v859_v9 = vsel %vm858_vm11, %v1746_v2, %v855_v7 }
 0x7f4   : > { %v860_v10 = vmul.f32 %v859_v9, %v843_v51 }
 0x7f6   : > { %1574 = vmatmul.msk.f32.vlgmr.msrb.gmra.mxu3 %vm465_vm0, %v860_v10 }
 0x879   : > { %v889_v15 = vpop.f32.mrf.mxu3 }
 0x87a   : > { %v890_v16 = vadd.f32 %v1719_v14, %v889_v15 }
 0x87c   : > { %v892_v17 = vmax.f32 %v890_v16, 0.0 }
 0x87e   : > { %1575 = vmatmul.msk.f32.vlgmr.msra.gmra.mxu0 %vm901_vm12, %v892_v17 }
 0x8fb   : > { %v922_v19 = vpop.f32.mrf.mxu0 }
 0x8fc   : > { %v925_v20 = vadd.f32 %v922_v19, %v838_v47 }
 0x8fe   : > { %v2380_v21 = vadd.f32 %v1720_v18, %v925_v20 }
 0x900   : > { %v931_v22 = vsel %vm465_vm0, %v2380_v21, 0.0 }
 0x901   : > { %932 = vadd.xlane.f32.xlu1 %v931_v22 }
 0x974   : > { %v933_v23 = vpop.xlane.xlu1 %932 }
 0x975   : > { %v934_v24 = vmul.f32 %v933_v23, %v2240_v8 }
 0x977   : > { %v935_v25 = vsub.f32 %v2380_v21, %v934_v24 }
 0x979   : > { %v936_v26 = vmul.f32 %v935_v25, %v935_v25 }
 0x97b   : > { %v937_v27 = vsel %vm465_vm0, %v936_v26, 0.0 }
 0x97c   : > { %938 = vadd.xlane.f32.xlu2 %v937_v27 }
 0x9ef   : > { %v939_v32 = vpop.xlane.xlu2 %938 }
 0x9f0   : > { %v940_v33 = vmul.f32 %v939_v32, %v2240_v8 }
 0x9f2   : > { %v941_v34 = vadd.f32 1e-05, %v940_v33 }
 0x9f4   : > { %1747 = vrsqrt.f32 %v941_v34  ;;  %vm948_vm14 = vweird.f32 %v941_v34 }
 0x9fa   : > { %v1748_v35 = vpop.eup %1747 }
 0x9fb   : > { %v943_v36 = vmul.f32 %v1748_v35, %v941_v34  ;;  %vm949_vm13 = vweird.f32 %v1748_v35 }
 0x9fc   : > { %vm950_vm15 = vmor %vm948_vm14, %vm949_vm13 }
 0x9fd   : > { %v944_v37 = vmul.f32 %v1748_v35, %v943_v36 }
 0x9ff   : > { %v945_v38 = vmul.f32 0.5, %v944_v37 }
 0xa01   : > { %v946_v39 = vsub.f32 1.5, %v945_v38 }
 0xa03   : > { %v947_v40 = vmul.f32 %v1748_v35, %v946_v39 }
 0xa05   : > { %v951_v41 = vsel %vm950_vm15, %v1748_v35, %v947_v40 }
 0xa06   : > { %v952_v43 = vmul.f32 %v951_v41, %v935_v25 }
 0xa08   : > { %1581 = vmatmul.msk.f32.vlgmr.msra.gmra.mxu2 %vm465_vm0, %v952_v43 }
 0xa8b   : > { %v983_v45 = vpop.f32.mrf.mxu2 }
 0xa8c   : > { %v2404_v46 = vadd.f32 %v1721_v44, %v983_v45  ;;  %v1597_v44 = vld [vmem:[%s2562_s4 + $0x38] sm:$0xff]  ;;  %v1596_v45 = vld [vmem:[%s2562_s4 + $0x30] sm:$0xff] }
 0xa8e   : > { %1024 = vrot.lane.b32.xlu2 %v2404_v46, %s2006_s24  ;;  %987 = vrot.lane.b32.xlu0 %v2404_v46, %s2007_s7  ;;  %s2601_s24 = smov 48   ;;  %s2602_s7 = smov 8  }
 0xa96   : > { %1050 = vrot.lane.b32.xlu0 %v2404_v46, %s2009_s13  ;;  %s2604_s13 = smov 16  }
 0xa9e   : > { %1117 = vrot.lane.b32.xlu0 %v2404_v46, %s2008_s11  ;;  %s2603_s11 = smov 24  }
 0xaa6   : > { %1115 = vrot.lane.b32.xlu0 %v2404_v46, %s2010_s16 }
 0xae8   : > { %v1025_v47 = vpop.permute.xlu2 %1024 }
 0xae9   : > { %1045 = vmatpush.msra.mxu3 %v1025_v47  ;;  %v1594_v47 = vld [vmem:[%s2562_s4 + $0x20] sm:$0xff] }
 0xb00   : > { %v988_v48 = vpop.permute.xlu0 %987 }
 0xb01   : > { %1582 = vmatpush.xpose.msk.msrb.mxu1 %vm532_vm5, %v988_v48 }
 0xb04   : > { %1583 = vmatmul.msk.f32.vlgmr.msrb.gmra.mxu1 %vm532_vm5, %v2404_v46 }
 0xb08   : > { %v1051_v49 = vpop.permute.xlu0 %1050 }
 0xb10   : > { %v1118_v50 = vpop.permute.xlu0 %1117 }
 0xb11   : > { %1588 = vmatpush.xpose.msk.msrb.mxu3 %vm532_vm5, %v1118_v50 }
 0xb18   : > { %v1116_v1 = vpop.permute.xlu0 %1115 }
 0xb81   : > { %v1010_v51 = vpop.f32.mrf.mxu1 }
 0xb82   : > { %v1011_v52 = vadd.f32 %v1010_v51, %v2287_v42 }
 0xb84   : > { %v1013_v53 = vsel %vm532_vm5, %v1011_v52, -inf }
 0xb85   : > { %1014 = vmax.xlane.f32.xlu1 %v1013_v53 }
 0xb9e   : > { %1052 = vrot.lane.b32.xlu1 %v2404_v46, %s2005_s17  ;;  %s2600_s17 = smov 40  }
 0xba6   : > { %1182 = vrot.lane.b32.xlu1 %v2404_v46, %s2011_s21 }
 0xbf8   : > { %v1015_v54 = vpop.xlane.xlu1 %1014 }
 0xbf9   : > { %v1016_v0 = vsub.f32 %v1011_v52, %v1015_v54  ;;  %v1722_v54 = vld [vmem:[#allocation7 + $0x1] ss:$0 sm:$0xff] }
 0xbfb   : > { %v1017_v55 = vmul.f32 1.442695, %v1016_v0 }
 0xbfd   : > { %1749 = vpow2.f32 %v1017_v55 }
 0xc03   : > { %v1750_v56 = vpop.eup %1749 }
 0xc04   : > { %v1019_v57 = vsel %vm532_vm5, %v1750_v56, 0.0 }
 0xc05   : > { %1020 = vadd.xlane.f32.xlu2 %v1019_v57 }
 0xc10   : > { %v1053_v58 = vpop.permute.xlu1 %1052 }
 0xc11   : > { %1585 = vmatpush.xpose.msk.msrb.mxu2 %vm532_vm5, %v1053_v58 }
 0xc14   : > { %1586 = vmatmul.msk.f32.vlgmr.msrb.gmra.mxu2 %vm532_vm5, %v1051_v49 }
 0xc18   : > { %v1183_v59 = vpop.permute.xlu1 %1182 }
 0xc19   : > { %1591 = vmatpush.xpose.msk.msra.mxu2 %vm532_vm5, %v1183_v59 }
 0xc1d   : > { %1180 = vrot.lane.b32.xlu2 %v2404_v46, %s2014_s12 }
 0xc78   : > { %v1021_v60 = vpop.xlane.xlu2 %1020 }
 0xc79   : > { %1751 = vrcp.f32 %v1021_v60 }
 0xc7f   : > { %v1752_v61 = vpop.eup %1751 }
 0xc80   : > { %v1023_v62 = vmul.f32 %v1752_v61, %v1750_v56  ;;  %v1181_v63 = vpop.permute.xlu2 %1180 }
 0xc81   : > { %1592 = vmatmul.msk.f32.vlgmr.msra.gmra.mxu2 %vm532_vm5, %v1181_v63  ;;  %v1602_v63 = vld [vmem:[%s2564_s6 + $0x38] sm:$0xff] }
 0xc82   : > { %1584 = vmatmul.msk.f32.vlgmr.msra.gmra.mxu3 %vm532_vm5, %v1023_v62 }
 0xc83   : > { %1280 = vmatpush.msra.mxu3 %v1597_v44 }
 0xc85   : > { %1281 = vmatpush.msra.mxu3 %v1596_v45 }
 0xc8a   : > { %1589 = vmatmul.msk.f32.vlgmr.msrb.gmra.mxu3 %vm532_vm5, %v1116_v1  ;;  %v1600_v1 = vld [vmem:[%s2564_s6 + $0x28] sm:$0xff] }
 0xc97   : > { %v1075_v2 = vpop.f32.mrf.mxu2 }
 0xc98   : > { %v1076_v3 = vadd.f32 %v1075_v2, %v2287_v42  ;;  %v1599_v2 = vld [vmem:[%s2564_s6 + $0x20] sm:$0xff] }
 0xc9a   : > { %v1078_v4 = vsel %vm532_vm5, %v1076_v3, -inf }
 0xc9b   : > { %1079 = vmax.xlane.f32.xlu1 %v1078_v4  ;;  %v1610_v4 = vld [vmem:[%s2566_s8 + $0x70] sm:$0xff] }
 0xd04   : > { %v1205_v5 = vpop.f32.mrf.mxu2 }
 0xd05   : > { %v1206_v6 = vadd.f32 %v1205_v5, %v2287_v42  ;;  %v2438_v7 = vpop.f32.mrf.mxu3  ;;  %v1609_v5 = vld [vmem:[%s2566_s8 + $0x68] sm:$0xff] }
 0xd07   : > { %v1208_v9 = vsel %vm532_vm5, %v1206_v6, -inf }
 0xd08   : > { %1209 = vmax.xlane.f32.xlu2 %v1208_v9 }
 0xd0d   : > { %v1140_v10 = vpop.f32.mrf.mxu3 }
 0xd0e   : > { %v1141_v11 = vadd.f32 %v1140_v10, %v2287_v42  ;;  %v1080_v12 = vpop.xlane.xlu1 %1079 }
 0xd0f   : > { %v1081_v13 = vsub.f32 %v1076_v3, %v1080_v12  ;;  %v1611_v3 = vld [vmem:[%s2566_s8 + $0x78] sm:$0xff] }
 0xd10   : > { %v1143_v14 = vsel %vm532_vm5, %v1141_v11, -inf  ;;  %1371 = vmatpush.msrb.mxu2 %v1611_v3 }
 0xd11   : > { %v1082_v15 = vmul.f32 1.442695, %v1081_v13  ;;  %1144 = vmax.xlane.f32.xlu0 %v1143_v14 }
 0xd12   : > { %1372 = vmatpush.msrb.mxu2 %v1610_v4 }
 0xd13   : > { %1753 = vpow2.f32 %v1082_v15 }
 0xd14   : > { %1373 = vmatpush.msrb.mxu2 %v1609_v5 }
 0xd19   : > { %v1754_v16 = vpop.eup %1753 }
 0xd1a   : > { %v1084_v17 = vsel %vm532_vm5, %v1754_v16, 0.0 }
 0xd1b   : > { %1085 = vadd.xlane.f32.xlu1 %v1084_v17 }
 0xd34   : > { %1089 = vrot.lane.b32.xlu1 %v2404_v46, %s2016_s25 }
 0xd7b   : > { %v1210_v18 = vpop.xlane.xlu2 %1209 }
 0xd7c   : > { %v1211_v19 = vsub.f32 %v1206_v6, %v1210_v18  ;;  %v1608_v6 = vld [vmem:[%s2566_s8 + $0x60] sm:$0xff] }
 0xd7d   : > { %1374 = vmatpush.msrb.mxu2 %v1608_v6 }
 0xd7e   : > { %v1212_v20 = vmul.f32 1.442695, %v1211_v19 }
 0xd80   : > { %1755 = vpow2.f32 %v1212_v20  ;;  %v1606_v20 = vld [vmem:[%s2566_s8 + $0x50] sm:$0xff] }
 0xd84   : > { %v1145_v22 = vpop.xlane.xlu0 %1144 }
 0xd85   : > { %v1146_v42 = vsub.f32 %v1141_v11, %v1145_v22  ;;  %v1605_v22 = vld [vmem:[%s2566_s8 + $0x48] sm:$0xff] }
 0xd86   : > { %v1756_v23 = vpop.eup %1755 }
 0xd87   : > { %v1147_v24 = vmul.f32 1.442695, %v1146_v42  ;;  %v1214_v25 = vsel %vm532_vm5, %v1756_v23, 0.0  ;;  %v1604_v42 = vld [vmem:[%s2566_s8 + $0x40] sm:$0xff] }
 0xd88   : > { %1215 = vadd.xlane.f32.xlu2 %v1214_v25 }
 0xd89   : > { %1757 = vpow2.f32 %v1147_v24 }
 0xd8e   : > { %v1086_v28 = vpop.xlane.xlu1 %1085 }
 0xd8f   : > { %v1758_v26 = vpop.eup %1757  ;;  %1759 = vrcp.f32 %v1086_v28 }
 0xd90   : > { %v1149_v27 = vsel %vm532_vm5, %v1758_v26, 0.0 }
 0xd91   : > { %1150 = vadd.xlane.f32.xlu0 %v1149_v27  ;;  %v1724_v27 = vld [vmem:[#allocation10 + $0x1] ss:$0 sm:$0xff] }
 0xd95   : > { %v1760_v29 = vpop.eup %1759 }
 0xd96   : > { %v1088_v30 = vmul.f32 %v1760_v29, %v1754_v16 }
 0xda0   : > { %1219 = vrot.lane.b32.xlu2 %v2404_v46, %s2600_s17 }
 0xda5   : > { %1154 = vrot.lane.b32.xlu0 %v2404_v46, %s2601_s24  ;;  %v1595_v46 = vld [vmem:[%s2562_s4 + $0x28] sm:$0xff] }
 0xda6   : > { %v1090_v31 = vpop.permute.xlu1 %1089  ;;  %1282 = vmatpush.msra.mxu3 %v1595_v46 }
 0xda7   : > { %1110 = vmatpush.msra.mxu1 %v1090_v31 }
 0xda8   : > { %1587 = vmatmul.msk.f32.vlgmr.msra.gmra.mxu1 %vm532_vm5, %v1088_v30  ;;  %1283 = vmatpush.msra.mxu3 %v1594_v47 }
 0xdfb   : > { %v1216_v32 = vpop.xlane.xlu2 %1215 }
 0xdfc   : > { %1761 = vrcp.f32 %v1216_v32 }
 0xe02   : > { %v1762_v33 = vpop.eup %1761 }
 0xe03   : > { %v1218_v34 = vmul.f32 %v1762_v33, %v1756_v23  ;;  %v1220_v35 = vpop.permute.xlu2 %1219  ;;  %v1723_v23 = vld [vmem:[#allocation8 + $0x1] ss:$0 sm:$0xff] }
 0xe04   : > { %1240 = vmatpush.msrb.mxu1 %v1220_v35  ;;  %v1151_v36 = vpop.xlane.xlu0 %1150 }
 0xe05   : > { %1593 = vmatmul.msk.f32.vlgmr.msrb.gmra.mxu1 %vm532_vm5, %v1218_v34  ;;  %1763 = vrcp.f32 %v1151_v36 }
 0xe0b   : > { %v1764_v37 = vpop.eup %1763 }
 0xe0c   : > { %v1153_v38 = vmul.f32 %v1764_v37, %v1758_v26 }
 0xe17   : > { %v1155_v39 = vpop.permute.xlu0 %1154 }
 0xe18   : > { %1175 = vmatpush.msrb.mxu0 %v1155_v39 }
 0xe19   : > { %1590 = vmatmul.msk.f32.vlgmr.msrb.gmra.mxu0 %vm532_vm5, %v1153_v38 }
 0xe1a   : > { %1342 = vmatpush.msra.mxu0 %v1602_v63 }
 0xe25   : > { %v1112_v40 = vpop.f32.mrf.mxu1 }
 0xe26   : > { %1246 = vrot.lane.b32.xlu0 %v1112_v40, %s2602_s7  ;;  %s1424_s7 = scalar_lea.hbm %s2568_s10, %s1614_s15 }
 0xe27   : > { %s1428_s21 = sshll.u32 %s1424_s7, 4  ;;  %s1429_s21 = int_to_ptr.hbm [resolvable:$true] %s1428_s21 }
 0xe28   : > { %s1933_s12 = sshra.s32 %s1429_s21, 4  ;;  %s1934_s12 = int_to_ptr.hbm [resolvable:$true] %s1933_s12 }
 0xe29   : > { %s1935_s25 = scalar_lea.hbm %s1934_s12, 8  ;;  %p1940_p7 = scmp.lt.s32.totalorder %s1934_s12, %s2568_s10 }
 0xe2a   : > { %p1936_p1 = scmp.ne.s32.totalorder %s1934_s12, %s1935_s25  ;;  %p1941_p9 = scmp.lt.s32.totalorder %s1939_s22, %s1935_s25 }
 0xe2c   : > { %p1937_p3 = pnand %p1936_p1, %p2155_p0  ;;  %p1942_p8 = por %p1941_p9, %p1940_p7 }
 0xe2e   : > { %p1938_p13 = pneg %p1937_p3 }
 0xe30   : > { %p1943_p10 = pnand %p1942_p8, %p1938_p13 }
 0xe82   : > { %v1242_v41 = vpop.f32.mrf.mxu1 }
 0xe83   : > { %1254 = vrot.lane.b32.xlu2 %v1242_v41, %s2603_s11  ;;  %s2605_s11 = sshll.u32 %s2212_s9, 3 }
 0xe96   : > { %v1177_v43 = vpop.f32.mrf.mxu0 }
 0xe97   : > { %1250 = vrot.lane.b32.xlu1 %v1177_v43, %s2604_s13  ;;  %s460_s13 = scalar_lea.vmem [#allocation11], %s2605_s11 }
 0xe98   : > { %v1247_v48 = vpop.permute.xlu0 %1246  ;;  %s1426_s16 = sshll.u32 %s460_s13, 4  ;;  %s1427_s16 = int_to_ptr.vmem [resolvable:$true] %s1426_s16 }
 0xe99   : > { %v1257_v49 = vsel %vm532_vm5, %v2438_v7, %v1247_v48  ;;  %v1607_v7 = vld [vmem:[%s2566_s8 + $0x58] sm:$0xff] }
 0xe9a   : > { %1375 = vmatpush.msrb.mxu2 %v1607_v7 }
 0xe9c   : > { %1376 = vmatpush.msrb.mxu2 %v1606_v20 }
 0xe9e   : > { %1377 = vmatpush.msrb.mxu2 %v1605_v22 }
 0xea0   : > { %1378 = vmatpush.msrb.mxu2 %v1604_v42 }
 0xedd   : > { %v1255_v51 = vpop.permute.xlu2 %1254 }
 0xf09   : > { %v1251_v50 = vpop.permute.xlu1 %1250 }
 0xf0a   : > { %v1258_v52 = vsel %vm802_vm7, %v1257_v49, %v1251_v50 }
 0xf0b   : > { %v1259_v53 = vsel %vm804_vm8, %v1258_v52, %v1255_v51 }
 0xf0c   : > { %1598 = vmatmul.msk.f32.vlgmr.msra.gmra.mxu3 %vm465_vm0, %v1259_v53 }
 0xf8f   : > { %v1285_v0 = vpop.f32.mrf.mxu3 }
 0xf90   : > { %v1288_v55 = vadd.f32 %v1285_v0, %v2380_v21  ;;  %v1601_v21 = vld [vmem:[%s2564_s6 + $0x30] sm:$0xff] }
 0xf91   : > { %1343 = vmatpush.msra.mxu0 %v1601_v21 }
 0xf92   : > { %v1294_v56 = vadd.f32 %v1722_v54, %v1288_v55 }
 0xf93   : > { %1344 = vmatpush.msra.mxu0 %v1600_v1 }
 0xf94   : > { %v1295_v57 = vsel %vm465_vm0, %v1294_v56, 0.0 }
 0xf95   : > { %1296 = vadd.xlane.f32.xlu0 %v1295_v57  ;;  %1345 = vmatpush.msra.mxu0 %v1599_v2 }
0x1008   : > { %v1297_v58 = vpop.xlane.xlu0 %1296 }
0x1009   : > { %v1298_v59 = vmul.f32 %v1297_v58, %v2240_v8 }
0x100b   : > { %v1299_v60 = vsub.f32 %v1294_v56, %v1298_v59 }
0x100d   : > { %v1300_v61 = vmul.f32 %v1299_v60, %v1299_v60 }
0x100f   : > { %v1301_v62 = vsel %vm465_vm0, %v1300_v61, 0.0 }
0x1010   : > { %1302 = vadd.xlane.f32.xlu1 %v1301_v62 }
0x1083   : > { %v1303_v9 = vpop.xlane.xlu1 %1302 }
0x1084   : > { %v1304_v10 = vmul.f32 %v1303_v9, %v2240_v8 }
0x1086   : > { %v1305_v11 = vadd.f32 1e-05, %v1304_v10 }
0x1088   : > { %1765 = vrsqrt.f32 %v1305_v11  ;;  %vm1312_vm2 = vweird.f32 %v1305_v11 }
0x108e   : > { %v1766_v12 = vpop.eup %1765 }
0x108f   : > { %v1307_v13 = vmul.f32 %v1766_v12, %v1305_v11  ;;  %vm1313_vm1 = vweird.f32 %v1766_v12 }
0x1090   : > { %vm1314_vm3 = vmor %vm1312_vm2, %vm1313_vm1 }
0x1091   : > { %v1308_v14 = vmul.f32 %v1766_v12, %v1307_v13 }
0x1093   : > { %v1309_v15 = vmul.f32 0.5, %v1308_v14 }
0x1095   : > { %v1310_v16 = vsub.f32 1.5, %v1309_v15 }
0x1097   : > { %v1311_v17 = vmul.f32 %v1766_v12, %v1310_v16 }
0x1099   : > { %v1315_v18 = vsel %vm1314_vm3, %v1766_v12, %v1311_v17 }
0x109a   : > { %v1316_v19 = vmul.f32 %v1315_v18, %v1299_v60 }
0x109c   : > { %1603 = vmatmul.msk.f32.vlgmr.msra.gmra.mxu0 %vm465_vm0, %v1316_v19 }
0x1119   : > { %v1347_v24 = vpop.f32.mrf.mxu0 }
0x111a   : > { %v1348_v25 = vadd.f32 %v1723_v23, %v1347_v24 }
0x111c   : > { %v1350_v26 = vmax.f32 %v1348_v25, 0.0 }
0x111e   : > { %1612 = vmatmul.msk.f32.vlgmr.msrb.gmra.mxu2 %vm901_vm12, %v1350_v26 }
0x11a1   : > { %v1380_v28 = vpop.f32.mrf.mxu2 }
0x11a2   : > { %v1383_v29 = vadd.f32 %v1380_v28, %v1294_v56 }
0x11a4   : > { %v1389_v30 = vadd.f32 %v1724_v27, %v1383_v29 }
0x11a6   : > { %v1390_v31 = vsel %vm465_vm0, %v1389_v30, 0.0 }
0x11a7   : > { %1391 = vadd.xlane.f32.xlu2 %v1390_v31 }
0x121a   : > { %v1392_v32 = vpop.xlane.xlu2 %1391 }
0x121b   : > { %v1393_v33 = vmul.f32 %v1392_v32, %v2240_v8 }
0x121d   : > { %v1394_v34 = vsub.f32 %v1389_v30, %v1393_v33 }
0x121f   : > { %v1395_v35 = vmul.f32 %v1394_v34, %v1394_v34 }
0x1221   : > { %v1396_v36 = vsel %vm465_vm0, %v1395_v35, 0.0 }
0x1222   : > { %1397 = vadd.xlane.f32.xlu0 %v1396_v36 }
0x1295   : > { %v1398_v37 = vpop.xlane.xlu0 %1397 }
0x1296   : > { %v1399_v38 = vmul.f32 %v1398_v37, %v2240_v8 }
0x1298   : > { %v1400_v39 = vadd.f32 1e-05, %v1399_v38 }
0x129a   : > { %1767 = vrsqrt.f32 %v1400_v39  ;;  %vm1407_vm5 = vweird.f32 %v1400_v39 }
0x12a0   : > { %v1768_v40 = vpop.eup %1767 }
0x12a1   : > { %v1402_v41 = vmul.f32 %v1768_v40, %v1400_v39  ;;  %vm1408_vm4 = vweird.f32 %v1768_v40 }
0x12a2   : > { %vm1409_vm6 = vmor %vm1407_vm5, %vm1408_vm4 }
0x12a3   : > { %v1403_v43 = vmul.f32 %v1768_v40, %v1402_v41 }
0x12a5   : > { %v1404_v44 = vmul.f32 0.5, %v1403_v43 }
0x12a7   : > { %v1405_v45 = vsub.f32 1.5, %v1404_v44 }
0x12a9   : > { %v1406_v46 = vmul.f32 %v1768_v40, %v1405_v45 }
0x12ab   : > { %v1410_v8 = vsel %vm1409_vm6, %v1768_v40, %v1406_v46 }
0x12ac   : > { %v1411_v47 = vmul.f32 %v1410_v8, %v1394_v34 }
0x12ae   : > { %1412 = vst.msk [vmem:[%s460_s13] sm:$0xff] %vm465_vm0, %v1411_v47 }
0x12af   : > { %1946 = shalt.err (!%p1943_p10)
}
0x12b0   : > { %1633 = dma.vmem_to_hbm [thread:$0]  (%p2155_p0), %s1427_s16, 128, %s1429_s21, %s1414_s20  }
0x12b1 PF: > { %s2606_s9 = sld [smem:[#allocation17_spill]] }
0x12b2   : > { %s2608_s28 = sld [smem:[#allocation19_spill]] }
0x12b7   : > { %s1440_s27 = sand.u32 1, %s2606_s9  }
0x12b8   : > { %p2609_p11 = scmp.ge.s32.totalorder %s2608_s28, 2  ;;  %s1441_s29 = scalar_lea.sflag [#allocation4], %s1440_s27 }
0x12ba   : > { %p1653_p5 = pnand %p2609_p11, %p2163_p6 }
0x12bc   : > { %p1654_p12 = pneg %p1653_p5 }
0x12be   : > { %1980 = dma.done.wait (%p1654_p12), %s1441_s29, 128  }
0x12bf   : > { %1982 = vsyncadd (%p1654_p12), %s1441_s29, 4294967168  ;;  %s2610_s16 = sld [smem:[#allocation20_spill]]  ;;  %s2613_s13 = smov %s1989_s14 }
0x12c0   : > { %s2611_s15 = sld [smem:[#allocation18_spill]] }
0x12c1   : > { %s2612_s17 = sld [smem:[#allocation21_spill]] }
0x12c5   : > { %p27_p2 = scmp.ge.s32.totalorder %s2610_s16, 4  }
0x12c6   : > { %s2614_s14 = smov %s2611_s15 }
0x12c7   : > { %s2615_s15 = smov %s2612_s17  ;;  %29 = sbr.rel (!%p27_p2) target bundleno = 12 (0xc), region = 138 }
0x12cc   :  { %1447 = vsyncpa [#allocation3], 1 }
0x12cd   :  { %1449 = vsyncpa [#allocation3 + $0x1], 1 }
0x12ce   :  { %1450 = vsyncpa [#allocation6], 1 }
0x12cf   :  { %1452 = vsyncpa [#allocation6 + $0x1], 1 }
0x12d0   :  { %1453 = vsyncpa [#allocation9], 1 }
0x12d1   :  { %1454 = vsyncpa [#allocation4], 1 }
0x12d2   :  { %1456 = vsyncpa [#allocation4 + $0x1], 1 }

</bundles_post_ra>
